<compile_context>
chip_gen: v7x
topology: tpu7x:2x2x1
jax: 0.10.0
libtpu: 0.0.40
codegen_flags: <defaults>
</compile_context>

<pallas_src>
import jax
import jax.numpy as jnp
from jax.experimental import pallas as pl
from jax.experimental.pallas import tpu as pltpu


# ----------------------------- kernel helpers -------------------------------

_INV_SQRT2 = 0.7071067811865476


def _layernorm(x, gamma, beta, eps=1e-5):
    # PyTorch nn.LayerNorm: biased variance over the last dim, default eps=1e-5.
    mean = jnp.mean(x, axis=-1, keepdims=True)
    var = jnp.mean(jnp.square(x - mean), axis=-1, keepdims=True)
    return (x - mean) * jax.lax.rsqrt(var + eps) * gamma + beta


def _gelu(x):
    # Exact (erf-based) GELU, matching nn.GELU() default.  Kept in f32.
    return 0.5 * x * (1.0 + jax.lax.erf(x * _INV_SQRT2))


# ------------------------------- the kernel ---------------------------------

def _mixer_block_kernel(x_ref,
                        ln0_g_ref, ln0_b_ref,
                        tw0t_ref, tb0_ref, tw1t_ref, tb1_ref,
                        ln1_g_ref, ln1_b_ref,
                        cw0_ref, cb0_ref, cw1_ref, cb1_ref,
                        o_ref):
    bb, s, c = x_ref.shape                  # (Bb, S, C) batch block
    td = tw0t_ref.shape[0]                  # tokens_mlp_dim
    cdt = tw0t_ref.dtype                    # matmul compute dtype (bf16 / f32)

    x = x_ref[...]                          # (Bb, S, C) f32

    # ---- LayerNorm_0 (f32 statistics), applied per row over channels -------
    ln0 = _layernorm(x, ln0_g_ref[...], ln0_b_ref[...])          # (Bb, S, C)

    # ---- token mixing: pre-transposed weights => no in-kernel transposes ---
    #   hT   = W0^T @ ln0          : (Td, S) @ (S, C) batched over Bb
    #   tokT = W1^T @ gelu(hT)     : (S, Td) @ (Td, C) batched over Bb
    w0 = jnp.broadcast_to(tw0t_ref[...][None], (bb, td, s))       # (Bb, Td, S)
    hT = jnp.einsum('bts,bsc->btc', w0, ln0.astype(cdt),
                    preferred_element_type=jnp.float32)           # (Bb, Td, C)
    hT = _gelu(hT + tb0_ref[...][None])                           # bias+GELU f32

    w1 = jnp.broadcast_to(tw1t_ref[...][None], (bb, s, td))       # (Bb, S, Td)
    tokT = jnp.einsum('bst,btc->bsc', w1, hT.astype(cdt),
                      preferred_element_type=jnp.float32)         # (Bb, S, C)
    x1 = x + tokT + tb1_ref[...][None]                            # residual f32

    # ---- channel mixing on the flattened (Bb*S, C) slab (big MXU M dim) ----
    x1_2d = x1.reshape(bb * s, c)                                 # no-op relayout
    ln1 = _layernorm(x1_2d, ln1_g_ref[...], ln1_b_ref[...])       # (Bb*S, C)
    h2 = jnp.dot(ln1.astype(cdt), cw0_ref[...],
                 preferred_element_type=jnp.float32) + cb0_ref[...]
    h2 = _gelu(h2)
    ch = jnp.dot(h2.astype(cdt), cw1_ref[...],
                 preferred_element_type=jnp.float32) + cb1_ref[...]
    out = x1_2d + ch

    o_ref[...] = out.reshape(bb, s, c).astype(o_ref.dtype)


# --------------------------- block-size heuristics ---------------------------

def _block_vmem_bytes(bb, s, c, td, cd, wbytes):
    """Rough per-step VMEM footprint (double-buffered I/O + weights + temps)."""
    io = 2 * 2 * bb * s * c * 4                        # x + out, 2x buffered, f32
    wts = 2 * wbytes * (2 * td * s + 2 * c * cd)       # 4 weight mats, 2x buffered
    small = 16 * 4096                                  # padded bias / LN tiles
    tmp = 4 * (5 * bb * s * c + 2 * bb * td * c + 2 * bb * s * cd)  # temporaries
    return io + wts + small + tmp


def _choose_batch_block(b, s, c, td, cd, wbytes, budget_bytes):
    divisors = [d for d in range(1, b + 1) if b % d == 0]
    best = 1
    for d in divisors:
        if d * s <= 1024 and _block_vmem_bytes(d, s, c, td, cd, wbytes) <= budget_bytes:
            best = d
    # v7x megacore: prefer >= 2 grid steps, but only if M = Bb*S stays >= 256.
    if b // best < 2:
        for d in reversed(divisors):
            if d < best and (b // d) >= 2 and d * s >= 256:
                best = d
                break
    return best


# ------------------------------- wrapper -------------------------------------

def mixer_block(x, params, *, compute_dtype=jnp.bfloat16, batch_block=None):
    """x: (B, S, C) f32.  params: natural (PyTorch-style) layout, see init_params."""
    B, S, C = x.shape
    Td = params["tw0"].shape[1]
    Cd = params["cw0"].shape[1]
    wbytes = jnp.dtype(compute_dtype).itemsize

    if batch_block is None:
        batch_block = _choose_batch_block(B, S, C, Td, Cd, wbytes,
                                          budget_bytes=28 << 20)
    Bb = batch_block
    assert B % Bb == 0, "batch_block must divide the batch size"
    grid = (B // Bb,)

    # Host-side layout plumbing (done once per call, outside the kernel):
    #  - pre-transpose token-mixing weights so the kernel needs no transposes,
    #  - cast matmul weights to the MXU compute dtype (f32 accumulation),
    #  - biases / LayerNorm params stay f32 (elementwise math stays f32).
    tw0t = params["tw0"].T.astype(compute_dtype)     # (Td, S)
    tw1t = params["tw1"].T.astype(compute_dtype)     # (S, Td)
    tb0c = params["tb0"].T.astype(jnp.float32)       # (Td, 1)
    tb1c = params["tb1"].T.astype(jnp.float32)       # (S, 1)
    cw0c = params["cw0"].astype(compute_dtype)       # (C, Cd)
    cw1c = params["cw1"].astype(compute_dtype)       # (Cd, C)

    p_args = [params["ln0_g"], params["ln0_b"],
              tw0t, tb0c, tw1t, tb1c,
              params["ln1_g"], params["ln1_b"],
              cw0c, params["cb0"], cw1c, params["cb1"]]

    def full_spec(arr):
        # Whole (small) parameter array resident in VMEM, same block each step.
        # TODO(synk): on v7x (64 MiB VMEM) consider pipeline_mode=pl.Buffered(1)
        # for these constant-index weight blocks to avoid double-buffering them.
        return pl.BlockSpec(arr.shape, lambda i: (0,) * arr.ndim)

    vmem_limit = int(min(64 << 20,
                         max(32 << 20,
                             3 * _block_vmem_bytes(Bb, S, C, Td, Cd, wbytes) // 2)))

    return pl.pallas_call(
        _mixer_block_kernel,
        out_shape=jax.ShapeDtypeStruct((B, S, C), x.dtype),
        grid_spec=pltpu.PrefetchScalarGridSpec(
            num_scalar_prefetch=0,
            grid=grid,
            in_specs=[pl.BlockSpec((Bb, S, C), lambda i: (i, 0, 0))]
                     + [full_spec(a) for a in p_args],
            out_specs=pl.BlockSpec((Bb, S, C), lambda i: (i, 0, 0)),
        ),
        compiler_params=pltpu.CompilerParams(
            dimension_semantics=("parallel",),
            vmem_limit_bytes=vmem_limit,
        ),
    )(x, *p_args)


# --------------------------- parameter init ----------------------------------

def init_params(key, num_tokens, hidden_dim, tokens_mlp_dim, channels_mlp_dim):
    ks = jax.random.split(key, 8)
    scale = 0.02
    # Linear weights stored as (in, out) so y = x @ W + b (natural layout; the
    # wrapper pre-transposes the token-mixing weights for the kernel).
    return {
        "ln0_g": jnp.ones((1, hidden_dim), jnp.float32),
        "ln0_b": jnp.zeros((1, hidden_dim), jnp.float32),
        "tw0": scale * jax.random.normal(ks[0], (num_tokens, tokens_mlp_dim), jnp.float32),
        "tb0": scale * jax.random.normal(ks[1], (1, tokens_mlp_dim), jnp.float32),
        "tw1": scale * jax.random.normal(ks[2], (tokens_mlp_dim, num_tokens), jnp.float32),
        "tb1": scale * jax.random.normal(ks[3], (1, num_tokens), jnp.float32),
        "ln1_g": jnp.ones((1, hidden_dim), jnp.float32),
        "ln1_b": jnp.zeros((1, hidden_dim), jnp.float32),
        "cw0": scale * jax.random.normal(ks[4], (hidden_dim, channels_mlp_dim), jnp.float32),
        "cb0": scale * jax.random.normal(ks[5], (1, channels_mlp_dim), jnp.float32),
        "cw1": scale * jax.random.normal(ks[6], (channels_mlp_dim, hidden_dim), jnp.float32),
        "cb1": scale * jax.random.normal(ks[7], (1, hidden_dim), jnp.float32),
    }


# ----------------------------- pure-JAX reference ----------------------------

def mixer_block_ref(x, p):
    def ln(v, g, b):
        m = jnp.mean(v, axis=-1, keepdims=True)
        var = jnp.mean((v - m) ** 2, axis=-1, keepdims=True)
        return (v - m) * jax.lax.rsqrt(var + 1e-5) * g + b

    def gelu(v):
        return 0.5 * v * (1.0 + jax.lax.erf(v * _INV_SQRT2))

    out = ln(x, p["ln0_g"], p["ln0_b"]).transpose(0, 2, 1)           # (B, C, S)
    tok = gelu(out @ p["tw0"] + p["tb0"]) @ p["tw1"] + p["tb1"]      # (B, C, S)
    x = x + tok.transpose(0, 2, 1)
    out = ln(x, p["ln1_g"], p["ln1_b"])
    ch = gelu(out @ p["cw0"] + p["cb0"]) @ p["cw1"] + p["cb1"]
    return x + ch


# ----------------------------------- main -------------------------------------

if __name__ == "__main__":
    # Small but lane-dense shapes: hidden_dim C = 128 keeps the output store
    # unmasked (lane-dense), S is a multiple of 8 for cheap (Bb,S,C)<->(Bb*S,C)
    # collapses.
    B, S, C = 4, 16, 128                 # batch, num_tokens, hidden_dim
    tokens_mlp_dim, channels_mlp_dim = 64, 256

    key = jax.random.PRNGKey(0)
    kx, kp = jax.random.split(key)
    x = jax.random.normal(kx, (B, S, C), jnp.float32)
    params = init_params(kp, S, C, tokens_mlp_dim, channels_mlp_dim)

    out = mixer_block(x, params)          # bf16 matmuls, f32 accumulation
    out = jax.block_until_ready(out)

    ref = mixer_block_ref(x, params)      # pure-f32 reference
    assert out.shape == (B, S, C)
    # bf16 matmul operands => small deviation vs the f32 reference.
    assert jnp.allclose(out, ref, atol=1e-2, rtol=1e-2), "mismatch vs reference"

    print("KERNEL_OK")
</pallas_src>

<mosaic_0001>
module attributes {stable_mosaic.version = 11 : i64} {
  func.func @_mixer_block_kernel(%arg0: i32, %arg1: memref<4x16x128xf32, #tpu.memory_space<vmem>>, %arg2: memref<1x128xf32, #tpu.memory_space<vmem>>, %arg3: memref<1x128xf32, #tpu.memory_space<vmem>>, %arg4: memref<64x16xbf16, #tpu.memory_space<vmem>>, %arg5: memref<64x1xf32, #tpu.memory_space<vmem>>, %arg6: memref<16x64xbf16, #tpu.memory_space<vmem>>, %arg7: memref<16x1xf32, #tpu.memory_space<vmem>>, %arg8: memref<1x128xf32, #tpu.memory_space<vmem>>, %arg9: memref<1x128xf32, #tpu.memory_space<vmem>>, %arg10: memref<128x256xbf16, #tpu.memory_space<vmem>>, %arg11: memref<1x256xf32, #tpu.memory_space<vmem>>, %arg12: memref<256x128xbf16, #tpu.memory_space<vmem>>, %arg13: memref<1x128xf32, #tpu.memory_space<vmem>>, %arg14: memref<4x16x128xf32, #tpu.memory_space<vmem>>) attributes {dimension_semantics = [#tpu.dimension_semantics<parallel>], iteration_bounds = array<i64: 1>, scalar_prefetch = 0 : i64, scratch_operands = 0 : i64, tpu.core_type = #tpu.core_type<tc>, window_params = [{transform_indices = @transform_0, window_bounds = array<i64: 4, 16, 128>}, {pipeline_mode = #tpu.pipeline_mode<synchronous>, transform_indices = @transform_1, window_bounds = array<i64: 1, 128>}, {pipeline_mode = #tpu.pipeline_mode<synchronous>, transform_indices = @transform_2, window_bounds = array<i64: 1, 128>}, {pipeline_mode = #tpu.pipeline_mode<synchronous>, transform_indices = @transform_3, window_bounds = array<i64: 64, 16>}, {pipeline_mode = #tpu.pipeline_mode<synchronous>, transform_indices = @transform_4, window_bounds = array<i64: 64, 1>}, {pipeline_mode = #tpu.pipeline_mode<synchronous>, transform_indices = @transform_5, window_bounds = array<i64: 16, 64>}, {pipeline_mode = #tpu.pipeline_mode<synchronous>, transform_indices = @transform_6, window_bounds = array<i64: 16, 1>}, {pipeline_mode = #tpu.pipeline_mode<synchronous>, transform_indices = @transform_7, window_bounds = array<i64: 1, 128>}, {pipeline_mode = #tpu.pipeline_mode<synchronous>, transform_indices = @transform_8, window_bounds = array<i64: 1, 128>}, {pipeline_mode = #tpu.pipeline_mode<synchronous>, transform_indices = @transform_9, window_bounds = array<i64: 128, 256>}, {pipeline_mode = #tpu.pipeline_mode<synchronous>, transform_indices = @transform_10, window_bounds = array<i64: 1, 256>}, {pipeline_mode = #tpu.pipeline_mode<synchronous>, transform_indices = @transform_11, window_bounds = array<i64: 256, 128>}, {pipeline_mode = #tpu.pipeline_mode<synchronous>, transform_indices = @transform_12, window_bounds = array<i64: 1, 128>}, {transform_indices = @transform_13, window_bounds = array<i64: 4, 16, 128>}]} {
    %c0 = arith.constant 0 : index
    %c0_0 = arith.constant 0 : index
    %c0_1 = arith.constant 0 : index
    %0 = vector.load %arg1[%c0, %c0_0, %c0_1] : memref<4x16x128xf32, #tpu.memory_space<vmem>>, vector<4x16x128xf32>
    %c0_2 = arith.constant 0 : index
    %c0_3 = arith.constant 0 : index
    %1 = vector.load %arg2[%c0_2, %c0_3] : memref<1x128xf32, #tpu.memory_space<vmem>>, vector<1x128xf32>
    %c0_4 = arith.constant 0 : index
    %c0_5 = arith.constant 0 : index
    %2 = vector.load %arg3[%c0_4, %c0_5] : memref<1x128xf32, #tpu.memory_space<vmem>>, vector<1x128xf32>
    %cst = arith.constant dense<0.000000e+00> : vector<4x16xf32>
    %3 = vector.multi_reduction <add>, %0, %cst [2] : vector<4x16x128xf32> to vector<4x16xf32>
    %4 = vector.shape_cast %3 : vector<4x16xf32> to vector<4x16x1xf32>
    %cst_6 = arith.constant 1.280000e+02 : f32
    %5 = vector.broadcast %cst_6 : f32 to vector<4x16x1xf32>
    %6 = arith.divf %4, %5 : vector<4x16x1xf32>
    %7 = vector.broadcast %6 : vector<4x16x1xf32> to vector<4x16x128xf32>
    %8 = arith.subf %0, %7 : vector<4x16x128xf32>
    %9 = arith.mulf %8, %8 : vector<4x16x128xf32>
    %cst_7 = arith.constant dense<0.000000e+00> : vector<4x16xf32>
    %10 = vector.multi_reduction <add>, %9, %cst_7 [2] : vector<4x16x128xf32> to vector<4x16xf32>
    %11 = vector.shape_cast %10 : vector<4x16xf32> to vector<4x16x1xf32>
    %cst_8 = arith.constant 1.280000e+02 : f32
    %12 = vector.broadcast %cst_8 : f32 to vector<4x16x1xf32>
    %13 = arith.divf %11, %12 : vector<4x16x1xf32>
    %14 = vector.broadcast %6 : vector<4x16x1xf32> to vector<4x16x128xf32>
    %15 = arith.subf %0, %14 : vector<4x16x128xf32>
    %cst_9 = arith.constant 9.99999974E-6 : f32
    %16 = vector.broadcast %cst_9 : f32 to vector<4x16x1xf32>
    %17 = arith.addf %13, %16 : vector<4x16x1xf32>
    %18 = math.rsqrt %17 : vector<4x16x1xf32>
    %19 = vector.broadcast %18 : vector<4x16x1xf32> to vector<4x16x128xf32>
    %20 = arith.mulf %15, %19 : vector<4x16x128xf32>
    %21 = vector.shape_cast %1 : vector<1x128xf32> to vector<1x1x128xf32>
    %22 = vector.broadcast %21 : vector<1x1x128xf32> to vector<4x16x128xf32>
    %23 = arith.mulf %20, %22 : vector<4x16x128xf32>
    %24 = vector.shape_cast %2 : vector<1x128xf32> to vector<1x1x128xf32>
    %25 = vector.broadcast %24 : vector<1x1x128xf32> to vector<4x16x128xf32>
    %26 = arith.addf %23, %25 : vector<4x16x128xf32>
    %c0_10 = arith.constant 0 : index
    %c0_11 = arith.constant 0 : index
    %27 = vector.load %arg4[%c0_10, %c0_11] : memref<64x16xbf16, #tpu.memory_space<vmem>>, vector<64x16xbf16>
    %28 = vector.shape_cast %27 : vector<64x16xbf16> to vector<1x64x16xbf16>
    %29 = vector.shape_cast %28 : vector<1x64x16xbf16> to vector<1x64x16xbf16>
    %30 = vector.broadcast %29 : vector<1x64x16xbf16> to vector<4x64x16xbf16>
    %31 = arith.truncf %26 : vector<4x16x128xf32> to vector<4x16x128xbf16>
    "tpu.trace_start"() <{level = 10 : i32, message = "bts,bsc->btc"}> : () -> ()
    %cst_12 = arith.constant dense<0.000000e+00> : vector<4x64x128xf32>
    %32 = tpu.matmul %30, %31, %cst_12 {dimension_numbers = #tpu.dot_dimension_numbers<[2], [1], [1], [2], [0, 0, 0, 1, 1, 2], [0], [0]>} : vector<4x64x16xbf16>, vector<4x16x128xbf16>, vector<4x64x128xf32> -> vector<4x64x128xf32>
    "tpu.trace_stop"() : () -> ()
    %c0_13 = arith.constant 0 : index
    %c0_14 = arith.constant 0 : index
    %33 = vector.load %arg5[%c0_13, %c0_14] : memref<64x1xf32, #tpu.memory_space<vmem>>, vector<64x1xf32>
    %34 = vector.shape_cast %33 : vector<64x1xf32> to vector<1x64x1xf32>
    %35 = vector.broadcast %34 : vector<1x64x1xf32> to vector<4x64x128xf32>
    %36 = arith.addf %32, %35 : vector<4x64x128xf32>
    %cst_15 = arith.constant 5.000000e-01 : f32
    %37 = vector.broadcast %cst_15 : f32 to vector<4x64x128xf32>
    %38 = arith.mulf %37, %36 : vector<4x64x128xf32>
    %cst_16 = arith.constant 0.707106769 : f32
    %39 = vector.broadcast %cst_16 : f32 to vector<4x64x128xf32>
    %40 = arith.mulf %36, %39 : vector<4x64x128xf32>
    %41 = math.erf %40 : vector<4x64x128xf32>
    %cst_17 = arith.constant 1.000000e+00 : f32
    %42 = vector.broadcast %cst_17 : f32 to vector<4x64x128xf32>
    %43 = arith.addf %42, %41 : vector<4x64x128xf32>
    %44 = arith.mulf %38, %43 : vector<4x64x128xf32>
    %c0_18 = arith.constant 0 : index
    %c0_19 = arith.constant 0 : index
    %45 = vector.load %arg6[%c0_18, %c0_19] : memref<16x64xbf16, #tpu.memory_space<vmem>>, vector<16x64xbf16>
    %46 = vector.shape_cast %45 : vector<16x64xbf16> to vector<1x16x64xbf16>
    %47 = vector.shape_cast %46 : vector<1x16x64xbf16> to vector<1x16x64xbf16>
    %48 = vector.broadcast %47 : vector<1x16x64xbf16> to vector<4x16x64xbf16>
    %49 = arith.truncf %44 : vector<4x64x128xf32> to vector<4x64x128xbf16>
    "tpu.trace_start"() <{level = 10 : i32, message = "bst,btc->bsc"}> : () -> ()
    %cst_20 = arith.constant dense<0.000000e+00> : vector<4x16x128xf32>
    %50 = tpu.matmul %48, %49, %cst_20 {dimension_numbers = #tpu.dot_dimension_numbers<[2], [1], [1], [2], [0, 0, 0, 1, 1, 2], [0], [0]>} : vector<4x16x64xbf16>, vector<4x64x128xbf16>, vector<4x16x128xf32> -> vector<4x16x128xf32>
    "tpu.trace_stop"() : () -> ()
    %51 = arith.addf %0, %50 : vector<4x16x128xf32>
    %c0_21 = arith.constant 0 : index
    %c0_22 = arith.constant 0 : index
    %52 = vector.load %arg7[%c0_21, %c0_22] : memref<16x1xf32, #tpu.memory_space<vmem>>, vector<16x1xf32>
    %53 = vector.shape_cast %52 : vector<16x1xf32> to vector<1x16x1xf32>
    %54 = vector.broadcast %53 : vector<1x16x1xf32> to vector<4x16x128xf32>
    %55 = arith.addf %51, %54 : vector<4x16x128xf32>
    %56 = vector.shape_cast %55 : vector<4x16x128xf32> to vector<64x128xf32>
    %c0_23 = arith.constant 0 : index
    %c0_24 = arith.constant 0 : index
    %57 = vector.load %arg8[%c0_23, %c0_24] : memref<1x128xf32, #tpu.memory_space<vmem>>, vector<1x128xf32>
    %c0_25 = arith.constant 0 : index
    %c0_26 = arith.constant 0 : index
    %58 = vector.load %arg9[%c0_25, %c0_26] : memref<1x128xf32, #tpu.memory_space<vmem>>, vector<1x128xf32>
    %cst_27 = arith.constant dense<0.000000e+00> : vector<64xf32>
    %59 = vector.multi_reduction <add>, %56, %cst_27 [1] : vector<64x128xf32> to vector<64xf32>
    %60 = vector.shape_cast %59 : vector<64xf32> to vector<64x1xf32>
    %cst_28 = arith.constant 1.280000e+02 : f32
    %61 = vector.broadcast %cst_28 : f32 to vector<64x1xf32>
    %62 = arith.divf %60, %61 : vector<64x1xf32>
    %63 = vector.broadcast %62 : vector<64x1xf32> to vector<64x128xf32>
    %64 = arith.subf %56, %63 : vector<64x128xf32>
    %65 = arith.mulf %64, %64 : vector<64x128xf32>
    %cst_29 = arith.constant dense<0.000000e+00> : vector<64xf32>
    %66 = vector.multi_reduction <add>, %65, %cst_29 [1] : vector<64x128xf32> to vector<64xf32>
    %67 = vector.shape_cast %66 : vector<64xf32> to vector<64x1xf32>
    %cst_30 = arith.constant 1.280000e+02 : f32
    %68 = vector.broadcast %cst_30 : f32 to vector<64x1xf32>
    %69 = arith.divf %67, %68 : vector<64x1xf32>
    %70 = vector.broadcast %62 : vector<64x1xf32> to vector<64x128xf32>
    %71 = arith.subf %56, %70 : vector<64x128xf32>
    %cst_31 = arith.constant 9.99999974E-6 : f32
    %72 = vector.broadcast %cst_31 : f32 to vector<64x1xf32>
    %73 = arith.addf %69, %72 : vector<64x1xf32>
    %74 = math.rsqrt %73 : vector<64x1xf32>
    %75 = vector.broadcast %74 : vector<64x1xf32> to vector<64x128xf32>
    %76 = arith.mulf %71, %75 : vector<64x128xf32>
    %77 = vector.broadcast %57 : vector<1x128xf32> to vector<64x128xf32>
    %78 = arith.mulf %76, %77 : vector<64x128xf32>
    %79 = vector.broadcast %58 : vector<1x128xf32> to vector<64x128xf32>
    %80 = arith.addf %78, %79 : vector<64x128xf32>
    %81 = arith.truncf %80 : vector<64x128xf32> to vector<64x128xbf16>
    %c0_32 = arith.constant 0 : index
    %c0_33 = arith.constant 0 : index
    %82 = vector.load %arg10[%c0_32, %c0_33] : memref<128x256xbf16, #tpu.memory_space<vmem>>, vector<128x256xbf16>
    %cst_34 = arith.constant dense<0.000000e+00> : vector<64x256xf32>
    %83 = tpu.matmul %81, %82, %cst_34 {dimension_numbers = #tpu.dot_dimension_numbers<[1], [0], [0], [1], [0, 0, 1, 1], [], []>} : vector<64x128xbf16>, vector<128x256xbf16>, vector<64x256xf32> -> vector<64x256xf32>
    %c0_35 = arith.constant 0 : index
    %c0_36 = arith.constant 0 : index
    %84 = vector.load %arg11[%c0_35, %c0_36] : memref<1x256xf32, #tpu.memory_space<vmem>>, vector<1x256xf32>
    %85 = vector.broadcast %84 : vector<1x256xf32> to vector<64x256xf32>
    %86 = arith.addf %83, %85 : vector<64x256xf32>
    %cst_37 = arith.constant 5.000000e-01 : f32
    %87 = vector.broadcast %cst_37 : f32 to vector<64x256xf32>
    %88 = arith.mulf %87, %86 : vector<64x256xf32>
    %cst_38 = arith.constant 0.707106769 : f32
    %89 = vector.broadcast %cst_38 : f32 to vector<64x256xf32>
    %90 = arith.mulf %86, %89 : vector<64x256xf32>
    %91 = math.erf %90 : vector<64x256xf32>
    %cst_39 = arith.constant 1.000000e+00 : f32
    %92 = vector.broadcast %cst_39 : f32 to vector<64x256xf32>
    %93 = arith.addf %92, %91 : vector<64x256xf32>
    %94 = arith.mulf %88, %93 : vector<64x256xf32>
    %95 = arith.truncf %94 : vector<64x256xf32> to vector<64x256xbf16>
    %c0_40 = arith.constant 0 : index
    %c0_41 = arith.constant 0 : index
    %96 = vector.load %arg12[%c0_40, %c0_41] : memref<256x128xbf16, #tpu.memory_space<vmem>>, vector<256x128xbf16>
    %cst_42 = arith.constant dense<0.000000e+00> : vector<64x128xf32>
    %97 = tpu.matmul %95, %96, %cst_42 {dimension_numbers = #tpu.dot_dimension_numbers<[1], [0], [0], [1], [0, 0, 1, 1], [], []>} : vector<64x256xbf16>, vector<256x128xbf16>, vector<64x128xf32> -> vector<64x128xf32>
    %c0_43 = arith.constant 0 : index
    %c0_44 = arith.constant 0 : index
    %98 = vector.load %arg13[%c0_43, %c0_44] : memref<1x128xf32, #tpu.memory_space<vmem>>, vector<1x128xf32>
    %99 = vector.broadcast %98 : vector<1x128xf32> to vector<64x128xf32>
    %100 = arith.addf %97, %99 : vector<64x128xf32>
    %101 = arith.addf %56, %100 : vector<64x128xf32>
    %102 = vector.shape_cast %101 : vector<64x128xf32> to vector<4x16x128xf32>
    %c0_45 = arith.constant 0 : index
    %c0_46 = arith.constant 0 : index
    %c0_47 = arith.constant 0 : index
    %103 = vector.load %arg14[%c0_45, %c0_46, %c0_47] : memref<4x16x128xf32, #tpu.memory_space<vmem>>, vector<4x16x128xf32>
    tpu.vector_store %arg14[%c0_45, %c0_46, %c0_47], %102 {strides = array<i32>} : memref<4x16x128xf32, #tpu.memory_space<vmem>>, vector<4x16x128xf32>,
    return
  }
  func.func @transform_0(%arg0: i32) -> (i32, i32, i32) {
    %c0_i32 = arith.constant 0 : i32
    %c0_i32_0 = arith.constant 0 : i32
    %c0_i32_1 = arith.constant 0 : i32
    return %arg0, %c0_i32, %c0_i32_0 : i32, i32, i32
  }
  func.func @transform_1(%arg0: i32) -> (i32, i32) {
    %c0_i32 = arith.constant 0 : i32
    %c0_i32_0 = arith.constant 0 : i32
    %c0_i32_1 = arith.constant 0 : i32
    return %c0_i32, %c0_i32_0 : i32, i32
  }
  func.func @transform_2(%arg0: i32) -> (i32, i32) {
    %c0_i32 = arith.constant 0 : i32
    %c0_i32_0 = arith.constant 0 : i32
    %c0_i32_1 = arith.constant 0 : i32
    return %c0_i32, %c0_i32_0 : i32, i32
  }
  func.func @transform_3(%arg0: i32) -> (i32, i32) {
    %c0_i32 = arith.constant 0 : i32
    %c0_i32_0 = arith.constant 0 : i32
    %c0_i32_1 = arith.constant 0 : i32
    return %c0_i32, %c0_i32_0 : i32, i32
  }
  func.func @transform_4(%arg0: i32) -> (i32, i32) {
    %c0_i32 = arith.constant 0 : i32
    %c0_i32_0 = arith.constant 0 : i32
    %c0_i32_1 = arith.constant 0 : i32
    return %c0_i32, %c0_i32_0 : i32, i32
  }
  func.func @transform_5(%arg0: i32) -> (i32, i32) {
    %c0_i32 = arith.constant 0 : i32
    %c0_i32_0 = arith.constant 0 : i32
    %c0_i32_1 = arith.constant 0 : i32
    return %c0_i32, %c0_i32_0 : i32, i32
  }
  func.func @transform_6(%arg0: i32) -> (i32, i32) {
    %c0_i32 = arith.constant 0 : i32
    %c0_i32_0 = arith.constant 0 : i32
    %c0_i32_1 = arith.constant 0 : i32
    return %c0_i32, %c0_i32_0 : i32, i32
  }
  func.func @transform_7(%arg0: i32) -> (i32, i32) {
    %c0_i32 = arith.constant 0 : i32
    %c0_i32_0 = arith.constant 0 : i32
    %c0_i32_1 = arith.constant 0 : i32
    return %c0_i32, %c0_i32_0 : i32, i32
  }
  func.func @transform_8(%arg0: i32) -> (i32, i32) {
    %c0_i32 = arith.constant 0 : i32
    %c0_i32_0 = arith.constant 0 : i32
    %c0_i32_1 = arith.constant 0 : i32
    return %c0_i32, %c0_i32_0 : i32, i32
  }
  func.func @transform_9(%arg0: i32) -> (i32, i32) {
    %c0_i32 = arith.constant 0 : i32
    %c0_i32_0 = arith.constant 0 : i32
    %c0_i32_1 = arith.constant 0 : i32
    return %c0_i32, %c0_i32_0 : i32, i32
  }
  func.func @transform_10(%arg0: i32) -> (i32, i32) {
    %c0_i32 = arith.constant 0 : i32
    %c0_i32_0 = arith.constant 0 : i32
    %c0_i32_1 = arith.constant 0 : i32
    return %c0_i32, %c0_i32_0 : i32, i32
  }
  func.func @transform_11(%arg0: i32) -> (i32, i32) {
    %c0_i32 = arith.constant 0 : i32
    %c0_i32_0 = arith.constant 0 : i32
    %c0_i32_1 = arith.constant 0 : i32
    return %c0_i32, %c0_i32_0 : i32, i32
  }
  func.func @transform_12(%arg0: i32) -> (i32, i32) {
    %c0_i32 = arith.constant 0 : i32
    %c0_i32_0 = arith.constant 0 : i32
    %c0_i32_1 = arith.constant 0 : i32
    return %c0_i32, %c0_i32_0 : i32, i32
  }
  func.func @transform_13(%arg0: i32) -> (i32, i32, i32) {
    %c0_i32 = arith.constant 0 : i32
    %c0_i32_0 = arith.constant 0 : i32
    %c0_i32_1 = arith.constant 0 : i32
    return %arg0, %c0_i32, %c0_i32_0 : i32, i32, i32
  }
}

</mosaic_0001>

<bundles_post_ra>
// kernel: tpu_custom_call.1
= control target key start
LH: loop header
LB: loop body
LE: loop exit
PB: predicated region body
PF: predicated region fallthrough
CT: control target
= control target key end

     0   :  { %18 = vsyncpa [#allocation3], 0  ;;  %s2641_s0 = inlined_call_operand.hbm [shape: f32[4,16,128], index: 0, kind: input, shape index: {}]   ;;  %s2642_s1 = inlined_call_operand.vmem [shape: f32[1,128], index: 1, kind: input, shape index: {}]   ;;  %s2643_s2 = inlined_call_operand.vmem [shape: f32[1,128], index: 2, kind: input, shape index: {}]   ;;  %s2644_s3 = inlined_call_operand.vmem [shape: bf16[64,16], index: 3, kind: input, shape index: {}]   ;;  %s2645_s4 = inlined_call_operand.vmem [shape: f32[64,1], index: 4, kind: input, shape index: {}]   ;;  %s2646_s5 = inlined_call_operand.vmem [shape: bf16[16,64], index: 5, kind: input, shape index: {}]   ;;  %s2647_s6 = inlined_call_operand.vmem [shape: f32[16,1], index: 6, kind: input, shape index: {}]   ;;  %s2648_s7 = inlined_call_operand.vmem [shape: f32[1,128], index: 7, kind: input, shape index: {}]   ;;  %s2649_s8 = inlined_call_operand.vmem [shape: f32[1,128], index: 8, kind: input, shape index: {}]   ;;  %s2650_s9 = inlined_call_operand.vmem [shape: bf16[128,256], index: 9, kind: input, shape index: {}]   ;;  %s2651_s10 = inlined_call_operand.vmem [shape: f32[1,256], index: 10, kind: input, shape index: {}]   ;;  %s2652_s11 = inlined_call_operand.hbm [shape: bf16[256,128], index: 11, kind: input, shape index: {}]   ;;  %s2653_s12 = inlined_call_operand.vmem [shape: f32[1,128], index: 12, kind: input, shape index: {}]   ;;  %s2654_s13 = inlined_call_operand.hbm [shape: f32[4,16,128], index: 13, kind: output, shape index: {}]  }
   0x1   :  { %19 = vsyncpa [#allocation6], 0 }
   0x2   :  { %20 = vsyncpa [#allocation4], 0  ;;  %s2053_s25 = smov [#allocation2]   ;;  %s1981_s29 = scalar_lea.hbm %s2641_s0, 1024 }
   0x3   :  { %s26_s26 = sshll.u32 %s2053_s25, 4  ;;  %p1982_p0 = scmp.ne.s32.totalorder %s2641_s0, %s1981_s29  ;;  %s27_s26 = int_to_ptr.vmem [resolvable:$true] %s26_s26 }
   0x4   :  { %p1985_p1 = scmp.lt.u32.totalorder %s1981_s29, %s2641_s0 }
   0x6   :  { %p1987_p2 = pnand %p1985_p1, %p1982_p0 }
   0x8   :  { %1990 = shalt.err (!%p1987_p2)
}
   0x9   :  { %s1991_s17 = scalar_lea.vmem %s27_s26, 1024  ;;  %p1996_p4 = scmp.lt.s32.totalorder %s27_s26, %s27_s26 }
   0xa   :  { %p1992_p3 = scmp.ne.s32.totalorder %s27_s26, %s1991_s17  ;;  %p1997_p5 = scmp.lt.s32.totalorder %s1991_s17, %s1991_s17 }
   0xc   :  { %p1998_p6 = por %p1997_p5, %p1996_p4 }
   0xe   :  { %p1999_p7 = pnand %p1998_p6, %p1992_p3 }
  0x10   :  { %2002 = shalt.err (!%p1999_p7)
}
  0x11   :  { %s2054_s18 = smov 128   ;;  %s2055_s19 = smov 8  }
  0x12   :  { %32 = dma.hbm_to_vmem [thread:$0]  %s2641_s0, 1024, %s27_s26, [#allocation3], %s2054_s18, %s2054_s18, %s2055_s19  }
  0x13   :  { %s2056_s22 = smov [#allocation5]   ;;  %s2003_s27 = scalar_lea.hbm %s2652_s11, 2048 }
  0x14   :  { %s58_s23 = sshll.u32 %s2056_s22, 4  ;;  %p2004_p8 = scmp.ne.s32.totalorder %s2652_s11, %s2003_s27  ;;  %s59_s23 = int_to_ptr.vmem [resolvable:$true] %s58_s23 }
  0x15   :  { %p2007_p9 = scmp.lt.u32.totalorder %s2003_s27, %s2652_s11 }
  0x17   :  { %p2009_p10 = pnand %p2007_p9, %p2004_p8 }
  0x19   :  { %2012 = shalt.err (!%p2009_p10)
}
  0x1a   :  { %s2013_s15 = scalar_lea.vmem %s59_s23, 2048  ;;  %p2018_p12 = scmp.lt.s32.totalorder %s59_s23, %s59_s23 }
  0x1b   :  { %p2014_p11 = scmp.ne.s32.totalorder %s59_s23, %s2013_s15  ;;  %p2019_p13 = scmp.lt.s32.totalorder %s2013_s15, %s2013_s15 }
  0x1d   :  { %p2020_p0 = por %p2019_p13, %p2018_p12 }
  0x1f   :  { %p2021_p1 = pnand %p2020_p0, %p2014_p11 }
  0x21   :  { %2024 = shalt.err (!%p2021_p1)
}
  0x22   :  { %s2057_s0 = smov 64   ;;  %s2058_s26 = smov 4  }
  0x23   :  { %64 = dma.hbm_to_vmem [thread:$0]  %s2652_s11, 2048, %s59_s23, [#allocation6], %s2057_s0, %s2057_s0, %s2058_s26  }
  0x24   :  { %2047 = dma.done.wait [#allocation3], 1024  }
  0x25   :  { %2048 = vsyncadd [#allocation3], 4294966272 }
  0x26   :  { %2049 = dma.done.wait [#allocation6], 2048  }
  0x27   :  { %2050 = vsyncadd [#allocation6], 4294965248  ;;  %v74_v0 = vld [vmem:[#allocation2] sm:$0xff]  ;;  %v76_v1 = vld [vmem:[#allocation2 + $0x10] sm:$0xff]  ;;  %vm281_vm0 = vcmask 130048   ;;  %v2059_v42 = vmov 0  }
  0x28   :  { %84 = vadd.xlane.f32.xlu0 %v74_v0  ;;  %88 = vadd.xlane.f32.xlu1 %v76_v1  ;;  %v75_v2 = vld [vmem:[#allocation2 + $0x8] sm:$0xff]  ;;  %v77_v3 = vld [vmem:[#allocation2 + $0x18] sm:$0xff]  ;;  %v78_v4 = vld [vmem:[#allocation2 + $0x20] sm:$0xff]  ;;  %vm2061_vm1 = vmmov 0   ;;  %vm737_vm2 = vcmask 523264  }
  0x29   :  { %v79_v5 = vld [vmem:[#allocation2 + $0x28] sm:$0xff]  ;;  %v80_v6 = vld [vmem:[#allocation2 + $0x30] sm:$0xff]  ;;  %v81_v7 = vld [vmem:[#allocation2 + $0x38] sm:$0xff]  ;;  %1799 = vset.pattern.permute.xlu1 %v2059_v42  ;;  %1798 = vset.pattern.permute.xlu0 %v2059_v42 }
  0x2a   :  { %v2195_v40 = vld [vmem:[%s2644_s3] sm:$0xff]   ;;  %v214_v41 = vld [vmem:[%s2645_s4 + $0x8] sm:$0xff]  ;;  %v215_v44 = vld [vmem:[%s2645_s4 + $0x10] sm:$0xff] }
  0x2b   :  { %1702 = vmatprep.mubr.msk.bf16.mxu0 %vm281_vm0, %v2195_v40  ;;  %1712 = vmatprep.mubr.msk.bf16.mxu1 %vm281_vm0, %v2195_v40  ;;  %v213_v43 = vld [vmem:[%s2645_s4] sm:$0xff]  ;;  %v914_v45 = vld [vmem:[%s2647_s6 + $0x8] sm:$0xff]  ;;  %v216_v46 = vld [vmem:[%s2645_s4 + $0x18] sm:$0xff] }
  0x2c   :  { %86 = vadd.xlane.f32.xlu0 %v75_v2  ;;  %90 = vadd.xlane.f32.xlu1 %v77_v3  ;;  %v217_v47 = vld [vmem:[%s2645_s4 + $0x20] sm:$0xff]  ;;  %v218_v48 = vld [vmem:[%s2645_s4 + $0x28] sm:$0xff]  ;;  %v219_v49 = vld [vmem:[%s2645_s4 + $0x30] sm:$0xff] }
  0x2d   :  { %v220_v50 = vld [vmem:[%s2645_s4 + $0x38] sm:$0xff]  ;;  %v913_v51 = vld [vmem:[%s2647_s6] sm:$0xff] }
  0x30   :  { %92 = vadd.xlane.f32.xlu0 %v78_v4  ;;  %94 = vadd.xlane.f32.xlu1 %v79_v5 }
  0x34   :  { %96 = vadd.xlane.f32.xlu0 %v80_v6  ;;  %98 = vadd.xlane.f32.xlu1 %v81_v7 }
  0xb5   :  { %v85_v8 = vpop.xlane.xlu0 %84  ;;  %v89_v9 = vpop.xlane.xlu1 %88 }
  0xb6   :  { %v101_v10 = vmul.f32 0.0078125, %v85_v8  ;;  %v103_v11 = vmul.f32 0.0078125, %v89_v9 }
  0xb8   :  { %v2160_v12 = vsub.f32 %v74_v0, %v101_v10  ;;  %v2162_v13 = vsub.f32 %v76_v1, %v103_v11 }
  0xb9   :  { %v87_v14 = vpop.xlane.xlu0 %86  ;;  %v91_v15 = vpop.xlane.xlu1 %90 }
  0xba   :  { %v102_v16 = vmul.f32 0.0078125, %v87_v14  ;;  %v117_v17 = vmul.f32 %v2160_v12, %v2160_v12  ;;  %v104_v18 = vmul.f32 0.0078125, %v91_v15  ;;  %v119_v21 = vmul.f32 %v2162_v13, %v2162_v13  ;;  %v1558_v15 = vld [vmem:[%s2642_s1] ss:$0 sm:$0xff] }
  0xbc   :  { %v2166_v19 = vsub.f32 %v75_v2, %v102_v16  ;;  %125 = vadd.xlane.f32.xlu0 %v117_v17  ;;  %v2168_v20 = vsub.f32 %v77_v3, %v104_v18 }
  0xbd   :  { %v93_v22 = vpop.xlane.xlu0 %92  ;;  %v95_v23 = vpop.xlane.xlu1 %94 }
  0xbe   :  { %v105_v24 = vmul.f32 0.0078125, %v93_v22  ;;  %v118_v25 = vmul.f32 %v2166_v19, %v2166_v19  ;;  %v106_v26 = vmul.f32 0.0078125, %v95_v23  ;;  %v120_v29 = vmul.f32 %v2168_v20, %v2168_v20  ;;  %v1559_v23 = vld [vmem:[%s2643_s2] ss:$0 sm:$0xff] }
  0xc0   :  { %v2174_v27 = vsub.f32 %v78_v4, %v105_v24  ;;  %129 = vadd.xlane.f32.xlu0 %v119_v21  ;;  %127 = vadd.xlane.f32.xlu1 %v118_v25  ;;  %v2176_v28 = vsub.f32 %v79_v5, %v106_v26 }
  0xc1   :  { %v97_v30 = vpop.xlane.xlu0 %96  ;;  %v99_v31 = vpop.xlane.xlu1 %98 }
  0xc2   :  { %v107_v32 = vmul.f32 0.0078125, %v97_v30  ;;  %v121_v33 = vmul.f32 %v2174_v27, %v2174_v27  ;;  %v108_v34 = vmul.f32 0.0078125, %v99_v31  ;;  %v122_v37 = vmul.f32 %v2176_v28, %v2176_v28 }
  0xc4   :  { %v2182_v35 = vsub.f32 %v80_v6, %v107_v32  ;;  %131 = vadd.xlane.f32.xlu1 %v120_v29  ;;  %133 = vadd.xlane.f32.xlu0 %v121_v33  ;;  %v2184_v36 = vsub.f32 %v81_v7, %v108_v34 }
  0xc6   :  { %v123_v38 = vmul.f32 %v2182_v35, %v2182_v35  ;;  %v124_v39 = vmul.f32 %v2184_v36, %v2184_v36 }
  0xc8   :  { %135 = vadd.xlane.f32.xlu1 %v122_v37  ;;  %137 = vadd.xlane.f32.xlu0 %v123_v38 }
  0xcc   :  { %139 = vadd.xlane.f32.xlu1 %v124_v39 }
  0xdd   :  { %228 = vperm.xlu1 %1799, %v214_v41  }
  0xde   :  { %223 = vperm.xlu0 %1798, %v213_v43  }
  0xe1   :  { %233 = vperm.xlu1 %1799, %v215_v44  }
  0xe2   :  { %922 = vperm.xlu0 %1798, %v914_v45  }
  0xe5   :  { %238 = vperm.xlu1 %1799, %v216_v46  }
  0xe9   :  { %243 = vperm.xlu1 %1799, %v217_v47  }
  0xed   :  { %248 = vperm.xlu1 %1799, %v218_v48  }
  0xf1   :  { %253 = vperm.xlu1 %1799, %v219_v49  }
  0xf5   :  { %258 = vperm.xlu1 %1799, %v220_v50  }
  0xf9   :  { %917 = vperm.xlu1 %1799, %v913_v51  }
 0x149   :  { %v126_v52 = vpop.xlane.xlu0 %125 }
 0x14a   :  { %v141_v53 = vmul.f32 0.0078125, %v126_v52 }
 0x14c   :  { %v149_v54 = vadd.f32 1e-05, %v141_v53 }
 0x14d   :  { %v128_v55 = vpop.xlane.xlu1 %127  ;;  %v130_v56 = vpop.xlane.xlu0 %129 }
 0x14e   :  { %1845 = vrsqrt.f32 %v149_v54  ;;  %v142_v57 = vmul.f32 0.0078125, %v128_v55  ;;  %v143_v58 = vmul.f32 0.0078125, %v130_v56 }
 0x150   :  { %v150_v59 = vadd.f32 1e-05, %v142_v57  ;;  %v151_v60 = vadd.f32 1e-05, %v143_v58 }
 0x151   :  { %v132_v61 = vpop.xlane.xlu1 %131  ;;  %v134_v62 = vpop.xlane.xlu0 %133 }
 0x152   :  { %1847 = vrsqrt.f32 %v150_v59  ;;  %v144_v63 = vmul.f32 0.0078125, %v132_v61  ;;  %v145_v0 = vmul.f32 0.0078125, %v134_v62 }
 0x153   :  { %1849 = vrsqrt.f32 %v151_v60 }
 0x154   :  { %v152_v1 = vadd.f32 1e-05, %v144_v63  ;;  %v153_v2 = vadd.f32 1e-05, %v145_v0 }
 0x155   :  { %v136_v3 = vpop.xlane.xlu1 %135  ;;  %v138_v4 = vpop.xlane.xlu0 %137 }
 0x156   :  { %1851 = vrsqrt.f32 %v152_v1  ;;  %v146_v5 = vmul.f32 0.0078125, %v136_v3  ;;  %v147_v6 = vmul.f32 0.0078125, %v138_v4 }
 0x157   :  { %1853 = vrsqrt.f32 %v153_v2 }
 0x158   :  { %v1846_v7 = vpop.eup %1845  ;;  %v154_v8 = vadd.f32 1e-05, %v146_v5  ;;  %v155_v9 = vadd.f32 1e-05, %v147_v6 }
 0x159   :  { %v140_v10 = vpop.xlane.xlu1 %139  ;;  %v165_v11 = vmul.f32 %v1846_v7, %v2160_v12 }
 0x15a   :  { %1855 = vrsqrt.f32 %v154_v8  ;;  %v148_v14 = vmul.f32 0.0078125, %v140_v10 }
 0x15b   :  { %1857 = vrsqrt.f32 %v155_v9  ;;  %v179_v22 = vmul.f32 %v1558_v15, %v165_v11 }
 0x15c   :  { %v1848_v16 = vpop.eup %1847  ;;  %v156_v17 = vadd.f32 1e-05, %v148_v14 }
 0x15d   :  { %v1850_v18 = vpop.eup %1849  ;;  %v166_v21 = vmul.f32 %v1848_v16, %v2166_v19  ;;  %v193_v29 = vadd.f32 %v1559_v23, %v179_v22  ;;  %v2289_v63 = vpop.permute.xlu0 %223 }
 0x15e   :  { %1859 = vrsqrt.f32 %v156_v17  ;;  %v167_v12 = vmul.f32 %v1850_v18, %v2162_v13  ;;  %v1801_v13 = vld [vmem:[%s2644_s3 + $0x8] sm:$0xff]  }
 0x15f   :  { %v180_v24 = vmul.f32 %v1558_v15, %v166_v21 }
 0x160   :  { %v1852_v25 = vpop.eup %1851  ;;  %v181_v32 = vmul.f32 %v1558_v15, %v167_v12 }
 0x161   :  { %v1854_v26 = vpop.eup %1853  ;;  %v194_v30 = vadd.f32 %v1559_v23, %v180_v24  ;;  %v168_v31 = vmul.f32 %v1852_v25, %v2168_v20  ;;  %v1802_v20 = vld [vmem:[%s2644_s3 + $0x10] sm:$0xff]  }
 0x162   :  { %v169_v33 = vmul.f32 %v1854_v26, %v2174_v27  ;;  %v195_v41 = vadd.f32 %v1559_v23, %v181_v32 }
 0x163   :  { %v209_v34 = vpack.c.bf16 %v194_v30, %v193_v29  ;;  %v182_v19 = vmul.f32 %v1558_v15, %v168_v31 }
 0x164   :  { %v1856_v37 = vpop.eup %1855  ;;  %v183_v38 = vmul.f32 %v1558_v15, %v169_v33 }
 0x165   :  { %v1858_v39 = vpop.eup %1857  ;;  %1700 = vmatprep.subr.bf16.mxu0 %v209_v34  ;;  %v196_v43 = vadd.f32 %v1559_v23, %v182_v19  ;;  %v170_v44 = vmul.f32 %v1856_v37, %v2176_v28 }
 0x166   :  { %1701 = vmatpush3.bf16.msra.mxu0 %v209_v34  ;;  %v171_v27 = vmul.f32 %v1858_v39, %v2182_v35  ;;  %v197_v48 = vadd.f32 %v1559_v23, %v183_v38  ;;  %v1803_v35 = vld [vmem:[%s2644_s3 + $0x18] sm:$0xff]  }
 0x167   :  { %v210_v45 = vpack.c.bf16 %v196_v43, %v195_v41  ;;  %v184_v46 = vmul.f32 %v1558_v15, %v170_v44 }
 0x168   :  { %v1860_v47 = vpop.eup %1859  ;;  %v185_v51 = vmul.f32 %v1558_v15, %v171_v27 }
 0x169   :  { %1703 = vmatmul.mubr.msk.bf16.vlgmr.msra.gmra.mrb[0].mxu0 %vm281_vm0, %v1801_v13  ;;  %1710 = vmatprep.subr.bf16.mxu1 %v210_v45  ;;  %v198_v49 = vadd.f32 %v1559_v23, %v184_v46  ;;  %v172_v50 = vmul.f32 %v1860_v47, %v2184_v36  ;;  %v2060_v36 = vmov 0.0  }
 0x16a   :  { %1711 = vmatpush3.bf16.msra.mxu1 %v210_v45  ;;  %1706 = vmatprep.mubr.msk.bf16.mxu0 %vm281_vm0, %v1802_v20  ;;  %v199_v53 = vadd.f32 %v1559_v23, %v185_v51 }
 0x16b   :  { %v211_v28 = vpack.c.bf16 %v198_v49, %v197_v48  ;;  %v186_v52 = vmul.f32 %v1558_v15, %v172_v50 }
 0x16d   :  { %1713 = vmatmul.mubr.msk.bf16.vlgmr.msra.gmra.mrb[0].mxu1 %vm281_vm0, %v1801_v13  ;;  %1720 = vmatprep.subr.bf16.mxu0 %v211_v28  ;;  %v200_v54 = vadd.f32 %v1559_v23, %v186_v52 }
 0x16e   :  { %1721 = vmatpush3.bf16.msra.mxu0 %v211_v28  ;;  %1716 = vmatprep.mubr.msk.bf16.mxu1 %vm281_vm0, %v1802_v20 }
 0x16f   :  { %v212_v55 = vpack.c.bf16 %v200_v54, %v199_v53  ;;  %1740 = vmatprep.subr.bf16.mxu0 %v2060_v36 }
 0x171   :  { %1707 = vmatmul.mubr.msk.bf16.gmra.mrb[4].mxu0 %vm281_vm0, %v1803_v35  ;;  %1730 = vmatprep.subr.bf16.mxu1 %v212_v55 }
 0x172   :  { %1731 = vmatpush3.bf16.msra.mxu1 %v212_v55  ;;  %1722 = vmatprep.mubr.msk.bf16.mxu0 %vm281_vm0, %v2195_v40 }
 0x173   :  { %1752 = vmatprep.subr.bf16.mxu1 %v2060_v36 }
 0x175   :  { %1717 = vmatmul.mubr.msk.bf16.gmra.mrb[4].mxu1 %vm281_vm0, %v1803_v35 }
 0x176   :  { %1732 = vmatprep.mubr.msk.bf16.mxu1 %vm281_vm0, %v2195_v40  ;;  %v2278_v40 = vpop.permute.xlu1 %228 }
 0x179   :  { %1723 = vmatmul.mubr.msk.bf16.vlgmr.msra.gmra.mrb[8].mxu0 %vm281_vm0, %v1801_v13 }
 0x17a   :  { %1726 = vmatprep.mubr.msk.bf16.mxu0 %vm281_vm0, %v1802_v20  ;;  %v2280_v56 = vpop.permute.xlu1 %233 }
 0x17d   :  { %1733 = vmatmul.mubr.msk.bf16.vlgmr.msra.gmra.mrb[8].mxu1 %vm281_vm0, %v1801_v13 }
 0x17e   :  { %1736 = vmatprep.mubr.msk.bf16.mxu1 %vm281_vm0, %v1802_v20  ;;  %v2282_v57 = vpop.permute.xlu1 %238 }
 0x181   :  { %1727 = vmatmul.mubr.msk.bf16.gmra.mrb[12].mxu0 %vm281_vm0, %v1803_v35 }
 0x182   :  { %1748 = vmatprep.mubr.msk.bf16.mxu0 %vm2061_vm1, %v2060_v36  ;;  %v2284_v58 = vpop.permute.xlu1 %243 }
 0x185   :  { %1737 = vmatmul.mubr.msk.bf16.gmra.mrb[12].mxu1 %vm281_vm0, %v1803_v35 }
 0x186   :  { %1760 = vmatprep.mubr.msk.bf16.mxu1 %vm2061_vm1, %v2060_v36  ;;  %v2286_v59 = vpop.permute.xlu1 %248 }
 0x18a   :  { %v2293_v5 = vpop.permute.xlu1 %253 }
 0x18e   :  { %v2301_v30 = vpop.permute.xlu1 %258 }
 0x23c   :  { %v1704_v60 = vpop.f32.mrb[0].mxu0 }
 0x23d   :  { %v337_v61 = vadd.f32 %v1704_v60, %v2280_v56  ;;  %v328_v62 = vpop.f32.mrb[1].mxu0 }
 0x23e   :  { %v329_v0 = vadd.f32 %v328_v62, %v2289_v63  ;;  %v1705_v1 = vpop.f32.mrb[2].mxu0 }
 0x23f   :  { %v588_v2 = vmul.f32 0.70710677, %v337_v61  ;;  %v340_v3 = vadd.f32 %v1705_v1, %v2282_v57  ;;  %v331_v4 = vpop.f32.mrb[3].mxu0  ;;  %v556_v24 = vmul.f32 0.5, %v337_v61 }
 0x240   :  { %v586_v6 = vmul.f32 0.70710677, %v329_v0  ;;  %v332_v7 = vadd.f32 %v331_v4, %v2278_v40  ;;  %v1714_v8 = vpop.f32.mrb[0].mxu1  ;;  %v554_v31 = vmul.f32 0.5, %v329_v0 }
 0x241   :  { %1861 = verf.f32 %v588_v2  ;;  %v589_v9 = vmul.f32 0.70710677, %v340_v3  ;;  %v402_v10 = vadd.f32 %v1714_v8, %v2280_v56  ;;  %v393_v11 = vpop.f32.mrb[1].mxu1  ;;  %v557_v19 = vmul.f32 0.5, %v340_v3 }
 0x242   :  { %1863 = verf.f32 %v586_v6  ;;  %v587_v14 = vmul.f32 0.70710677, %v332_v7  ;;  %v394_v15 = vadd.f32 %v393_v11, %v2289_v63  ;;  %v1715_v16 = vpop.f32.mrb[2].mxu1  ;;  %v555_v13 = vmul.f32 0.5, %v332_v7 }
 0x243   :  { %1865 = verf.f32 %v589_v9  ;;  %v596_v17 = vmul.f32 0.70710677, %v402_v10  ;;  %v405_v18 = vadd.f32 %v1715_v16, %v2282_v57  ;;  %v396_v21 = vpop.f32.mrb[3].mxu1  ;;  %v564_v20 = vmul.f32 0.5, %v402_v10 }
 0x244   :  { %1867 = verf.f32 %v587_v14  ;;  %v594_v22 = vmul.f32 0.70710677, %v394_v15  ;;  %v397_v23 = vadd.f32 %v396_v21, %v2278_v40  ;;  %v1708_v12 = vpop.f32.mrb[4].mxu0  ;;  %v2307_v47 = vmul.f32 0.5, %v394_v15 }
 0x245   :  { %1869 = verf.f32 %v596_v17  ;;  %v597_v25 = vmul.f32 0.70710677, %v405_v18  ;;  %v353_v26 = vadd.f32 %v1708_v12, %v2293_v5  ;;  %v344_v29 = vpop.f32.mrb[5].mxu0  ;;  %v565_v28 = vmul.f32 0.5, %v405_v18 }
 0x246   :  { %1871 = verf.f32 %v594_v22  ;;  %v595_v32 = vmul.f32 0.70710677, %v397_v23  ;;  %v345_v33 = vadd.f32 %v344_v29, %v2284_v58  ;;  %v1709_v34 = vpop.f32.mrb[6].mxu0  ;;  %v563_v60 = vmul.f32 0.5, %v397_v23 }
 0x247   :  { %1873 = verf.f32 %v597_v25  ;;  %v592_v37 = vmul.f32 0.70710677, %v353_v26  ;;  %v356_v38 = vadd.f32 %v1709_v34, %v2301_v30  ;;  %v347_v39 = vpop.f32.mrb[7].mxu0  ;;  %v2316_v2 = vmul.f32 0.5, %v353_v26 }
 0x248   :  { %1875 = verf.f32 %v595_v32  ;;  %v590_v41 = vmul.f32 0.70710677, %v345_v33  ;;  %v348_v43 = vadd.f32 %v347_v39, %v2286_v59  ;;  %v1718_v44 = vpop.f32.mrb[4].mxu1  ;;  %v2319_v8 = vmul.f32 0.5, %v345_v33 }
 0x249   :  { %1877 = verf.f32 %v592_v37  ;;  %v593_v27 = vmul.f32 0.70710677, %v356_v38  ;;  %v418_v45 = vadd.f32 %v1718_v44, %v2293_v5  ;;  %v409_v46 = vpop.f32.mrb[5].mxu1  ;;  %v561_v15 = vmul.f32 0.5, %v356_v38 }
 0x24a   :  { %1879 = verf.f32 %v590_v41  ;;  %v591_v48 = vmul.f32 0.70710677, %v348_v43  ;;  %v2310_v49 = vadd.f32 %v409_v46, %v2284_v58  ;;  %v1719_v50 = vpop.f32.mrb[6].mxu1  ;;  %v559_v34 = vmul.f32 0.5, %v348_v43 }
 0x24b   :  { %v1862_v51 = vpop.eup %1861  ;;  %1881 = verf.f32 %v593_v27  ;;  %v600_v52 = vmul.f32 0.70710677, %v418_v45  ;;  %v2313_v35 = vadd.f32 %v1719_v50, %v2301_v30  ;;  %v412_v53 = vpop.f32.mrb[7].mxu1  ;;  %v568_v50 = vmul.f32 0.5, %v418_v45 }
 0x24c   :  { %v1864_v54 = vpop.eup %1863  ;;  %v652_v55 = vadd.f32 1.0, %v1862_v51  ;;  %1883 = verf.f32 %v591_v48  ;;  %v598_v61 = vmul.f32 0.70710677, %v2310_v49  ;;  %v1724_v62 = vpop.f32.mrb[8].mxu0  ;;  %v2322_v9 = vadd.f32 %v412_v53, %v2286_v59 }
 0x24d   :  { %v1866_v0 = vpop.eup %1865  ;;  %v650_v1 = vadd.f32 1.0, %v1864_v54  ;;  %1885 = verf.f32 %v600_v52  ;;  %v601_v3 = vmul.f32 0.70710677, %v2313_v35  ;;  %v458_v4 = vpop.f32.mrb[9].mxu0  ;;  %v2325_v16 = vadd.f32 %v1724_v62, %v2280_v56 }
 0x24e   :  { %v1868_v6 = vpop.eup %1867  ;;  %v653_v7 = vadd.f32 1.0, %v1866_v0  ;;  %1887 = verf.f32 %v598_v61  ;;  %v1725_v10 = vpop.f32.mrb[10].mxu0  ;;  %v684_v21 = vmul.f32 %v652_v55, %v556_v24  ;;  %v599_v12 = vmul.f32 0.70710677, %v2322_v9 }
 0x24f   :  { %v1870_v11 = vpop.eup %1869  ;;  %v651_v14 = vadd.f32 1.0, %v1868_v6  ;;  %1889 = verf.f32 %v601_v3  ;;  %v461_v17 = vpop.f32.mrb[11].mxu0  ;;  %v682_v29 = vmul.f32 %v650_v1, %v554_v31  ;;  %v604_v44 = vmul.f32 0.70710677, %v2325_v16 }
 0x250   :  { %v1872_v18 = vpop.eup %1871  ;;  %v685_v22 = vmul.f32 %v653_v7, %v557_v19  ;;  %v660_v23 = vadd.f32 1.0, %v1870_v11  ;;  %v1734_v25 = vpop.f32.mrb[8].mxu1  ;;  %1891 = verf.f32 %v599_v12  ;;  %v2336_v52 = vadd.f32 %v458_v4, %v2289_v63 }
 0x251   :  { %v1874_v26 = vpop.eup %1873  ;;  %v683_v32 = vmul.f32 %v651_v14, %v555_v13  ;;  %v658_v33 = vadd.f32 1.0, %v1872_v18  ;;  %v2328_v37 = vpop.f32.mrb[9].mxu1  ;;  %v2339_v53 = vadd.f32 %v1725_v10, %v2282_v57  ;;  %1893 = verf.f32 %v604_v44 }
 0x252   :  { %v1876_v38 = vpop.eup %1875  ;;  %v717_v39 = vpack.c.bf16 %v685_v22, %v684_v21  ;;  %v661_v41 = vadd.f32 1.0, %v1874_v26  ;;  %v2331_v27 = vpop.f32.mrb[10].mxu1  ;;  %v2333_v46 = vmul.f32 %v660_v23, %v564_v20  ;;  %v566_v20 = vmul.f32 0.5, %v2310_v49 }
 0x253   :  { %v1878_v24 = vpop.eup %1877  ;;  %v716_v19 = vpack.c.bf16 %v683_v32, %v682_v29  ;;  %v659_v48 = vadd.f32 1.0, %v1876_v38  ;;  %v526_v31 = vpop.f32.mrb[11].mxu1  ;;  %v690_v61 = vmul.f32 %v658_v33, %v2307_v47  ;;  %v2347_v4 = vadd.f32 %v461_v17, %v2278_v40 }
 0x254   :  { %v1880_v13 = vpop.eup %1879  ;;  %v693_v51 = vmul.f32 %v661_v41, %v565_v28  ;;  %v656_v43 = vadd.f32 1.0, %v1878_v24  ;;  %v1728_v54 = vpop.f32.mrb[12].mxu0  ;;  %v602_v49 = vmul.f32 0.70710677, %v2336_v52  ;;  %v2354_v10 = vadd.f32 %v1734_v25, %v2280_v56 }
 0x255   :  { %v1882_v55 = vpop.eup %1881  ;;  %v691_v62 = vmul.f32 %v659_v48, %v563_v60  ;;  %v654_v0 = vadd.f32 1.0, %v1880_v13  ;;  %v2343_v1 = vpop.f32.mrb[13].mxu0  ;;  %1741 = vmatpush3.bf16.msra.mxu0 %v716_v19  ;;  %v605_v17 = vmul.f32 0.70710677, %v2339_v53  ;;  %v569_v32 = vmul.f32 0.5, %v2313_v35 }
 0x256   :  { %v1884_v45 = vpop.eup %1883  ;;  %v721_v28 = vpack.c.bf16 %v693_v51, %v2333_v46  ;;  %v657_v3 = vadd.f32 1.0, %v1882_v55  ;;  %v2349_v6 = vpop.f32.mrb[14].mxu0  ;;  %1742 = vmatprep.subr.bf16.mxu0 %v2060_v36  ;;  %v688_v18 = vmul.f32 %v656_v43, %v2316_v2  ;;  %1895 = verf.f32 %v602_v49  ;;  %v2394_v51 = vld [vmem:[%s2646_s5] sm:$0xff]  }
 0x257   :  { %v1886_v47 = vpop.eup %1885  ;;  %v720_v60 = vpack.c.bf16 %v691_v62, %v690_v61  ;;  %v655_v7 = vadd.f32 1.0, %v1884_v45  ;;  %v477_v11 = vpop.f32.mrb[15].mxu0  ;;  %v686_v26 = vmul.f32 %v654_v0, %v2319_v8  ;;  %v567_v38 = vmul.f32 0.5, %v2322_v9 }
 0x258   :  { %v1888_v14 = vpop.eup %1887  ;;  %v689_v21 = vmul.f32 %v657_v3, %v561_v15  ;;  %v664_v22 = vadd.f32 1.0, %v1886_v47  ;;  %v1738_v23 = vpop.f32.mrb[12].mxu1  ;;  %1897 = verf.f32 %v605_v17  ;;  %v603_v35 = vmul.f32 0.70710677, %v2347_v4 }
 0x259   :  { %v1890_v12 = vpop.eup %1889  ;;  %v687_v29 = vmul.f32 %v655_v7, %v559_v34  ;;  %v539_v33 = vpop.f32.mrb[13].mxu1  ;;  %1743 = vmatpush3.bf16.msra.mxu0 %v717_v39  ;;  %1753 = vmatpush3.bf16.msra.mxu1 %v720_v60  ;;  %v662_v34 = vadd.f32 1.0, %v1888_v14  ;;  %v612_v24 = vmul.f32 0.70710677, %v2354_v10  ;;  %v2373_v9 = vadd.f32 %v2328_v37, %v2289_v63 }
 0x25a   :  { %v719_v56 = vpack.c.bf16 %v689_v21, %v688_v18  ;;  %v665_v25 = vadd.f32 1.0, %v1890_v12  ;;  %v2361_v2 = vpop.f32.mrb[14].mxu1  ;;  %1744 = vmatprep.subr.bf16.mxu0 %v2060_v36  ;;  %1754 = vmatprep.subr.bf16.mxu1 %v2060_v36  ;;  %v2365_v8 = vmul.f32 %v664_v22, %v568_v50  ;;  %v1892_v39 = vpop.eup %1891  ;;  %v2377_v19 = vadd.f32 %v2331_v27, %v2282_v57 }
 0x25b   :  { %v718_v15 = vpack.c.bf16 %v687_v29, %v686_v26  ;;  %v2368_v41 = vpop.f32.mrb[15].mxu1  ;;  %v663_v46 = vadd.f32 1.0, %v1892_v39  ;;  %1899 = verf.f32 %v603_v35  ;;  %v2380_v48 = vadd.f32 %v526_v31, %v2278_v40  ;;  %v1894_v40 = vpop.eup %1893 }
 0x25c   :  { %v697_v44 = vmul.f32 %v665_v25, %v569_v32  ;;  %v2383_v50 = vadd.f32 %v1728_v54, %v2293_v5  ;;  %1901 = verf.f32 %v612_v24  ;;  %v694_v63 = vmul.f32 %v662_v34, %v566_v20 }
 0x25d   :  { %1745 = vmatpush3.bf16.msra.mxu0 %v718_v15  ;;  %1755 = vmatpush3.bf16.msra.mxu1 %v721_v28  ;;  %v695_v57 = vmul.f32 %v663_v46, %v567_v38  ;;  %v610_v37 = vmul.f32 0.70710677, %v2373_v9  ;;  %v613_v27 = vmul.f32 0.70710677, %v2377_v19  ;;  %v611_v31 = vmul.f32 0.70710677, %v2380_v48 }
 0x25e   :  { %v723_v13 = vpack.c.bf16 %v697_v44, %v2365_v8  ;;  %1746 = vmatprep.subr.bf16.mxu0 %v2060_v36  ;;  %1756 = vmatprep.subr.bf16.mxu1 %v2060_v36  ;;  %v608_v54 = vmul.f32 0.70710677, %v2383_v50  ;;  %v2399_v55 = vadd.f32 %v2343_v1, %v2284_v58  ;;  %v2403_v61 = vadd.f32 %v2349_v6, %v2301_v30 }
 0x25f   :  { %v722_v43 = vpack.c.bf16 %v695_v57, %v694_v63  ;;  %1903 = verf.f32 %v610_v37  ;;  %v2406_v62 = vadd.f32 %v477_v11, %v2286_v59  ;;  %v2409_v0 = vadd.f32 %v1738_v23, %v2293_v5 }
 0x260   :  { %1905 = verf.f32 %v613_v27  ;;  %v1896_v20 = vpop.eup %1895  ;;  %v668_v45 = vadd.f32 1.0, %v1894_v40  ;;  %v606_v1 = vmul.f32 0.70710677, %v2399_v55  ;;  %v2414_v28 = vadd.f32 %v539_v33, %v2284_v58 }
 0x261   :  { %1747 = vmatpush3.bf16.msra.mxu0 %v719_v56  ;;  %1907 = verf.f32 %v611_v31  ;;  %1757 = vmatpush3.bf16.msra.mxu1 %v722_v43  ;;  %v572_v6 = vmul.f32 0.5, %v2325_v16  ;;  %v570_v47 = vmul.f32 0.5, %v2336_v52  ;;  %v609_v5 = vmul.f32 0.70710677, %v2403_v61 }
 0x262   :  { %1764 = vmatprep.subr.bf16.mxu0 %v2060_v36  ;;  %v1898_v3 = vpop.eup %1897  ;;  %1909 = verf.f32 %v608_v54  ;;  %1758 = vmatprep.subr.bf16.mxu1 %v2060_v36  ;;  %v573_v60 = vmul.f32 0.5, %v2339_v53  ;;  %v607_v58 = vmul.f32 0.70710677, %v2406_v62  ;;  %v666_v16 = vadd.f32 1.0, %v1896_v20 }
 0x263   :  { %v669_v7 = vadd.f32 1.0, %v1898_v3  ;;  %1911 = verf.f32 %v606_v1  ;;  %v571_v52 = vmul.f32 0.5, %v2347_v4  ;;  %v616_v49 = vmul.f32 0.70710677, %v2409_v0 }
 0x264   :  { %1749 = vmatmul.mubr.msk.bf16.vlgmr.msra.gmra.mrb[16].mxu0 %vm737_vm2, %v2394_v51  ;;  %1913 = verf.f32 %v609_v5  ;;  %v700_v14 = vmul.f32 %v668_v45, %v572_v6  ;;  %v614_v21 = vmul.f32 0.70710677, %v2414_v28  ;;  %v551_v17 = vadd.f32 %v2361_v2, %v2301_v30 }
 0x265   :  { %1772 = vmatprep.mubr.msk.bf16.mxu0 %vm2061_vm1, %v2060_v36  ;;  %v1900_v11 = vpop.eup %1899  ;;  %v701_v18 = vmul.f32 %v669_v7, %v573_v60  ;;  %1915 = verf.f32 %v607_v58  ;;  %1759 = vmatpush3.bf16.msra.mxu1 %v723_v13  ;;  %v2433_v23 = vadd.f32 %v2368_v41, %v2286_v59  ;;  %v698_v12 = vmul.f32 %v666_v16, %v570_v47 }
 0x266   :  { %v1902_v53 = vpop.eup %1901  ;;  %v667_v22 = vadd.f32 1.0, %v1900_v11  ;;  %1917 = verf.f32 %v616_v49  ;;  %1776 = vmatprep.subr.bf16.mxu1 %v2060_v36  ;;  %v617_v29 = vmul.f32 0.70710677, %v551_v17  ;;  %v580_v2 = vmul.f32 0.5, %v2354_v10 }
 0x267   :  { %v725_v4 = vpack.c.bf16 %v701_v18, %v700_v14  ;;  %1919 = verf.f32 %v614_v21  ;;  %v676_v33 = vadd.f32 1.0, %v1902_v53  ;;  %v615_v56 = vmul.f32 0.70710677, %v2433_v23 }
 0x268   :  { %v699_v26 = vmul.f32 %v667_v22, %v571_v52  ;;  %1761 = vmatmul.mubr.msk.bf16.vlgmr.msra.gmra.mrb[16].mxu1 %vm737_vm2, %v2394_v51  ;;  %1921 = verf.f32 %v617_v29  ;;  %v581_v15 = vmul.f32 0.5, %v2377_v19  ;;  %v578_v35 = vmul.f32 0.5, %v2373_v9 }
 0x269   :  { %v1904_v32 = vpop.eup %1903  ;;  %1784 = vmatprep.mubr.msk.bf16.mxu1 %vm2061_vm1, %v2060_v36  ;;  %1923 = verf.f32 %v615_v56  ;;  %v579_v41 = vmul.f32 0.5, %v2380_v48  ;;  %v708_v24 = vmul.f32 %v676_v33, %v580_v2  ;;  %v576_v40 = vmul.f32 0.5, %v2383_v50  ;;  %v1974_v33 = vld [vmem:[#allocation2 + $0x8] sm:$0xff] }
 0x26a   :  { %v1906_v30 = vpop.eup %1905  ;;  %v724_v59 = vpack.c.bf16 %v699_v26, %v698_v12  ;;  %v674_v25 = vadd.f32 1.0, %v1904_v32  ;;  %v577_v9 = vmul.f32 0.5, %v2403_v61  ;;  %v574_v54 = vmul.f32 0.5, %v2399_v55  ;;  %v918_v26 = vpop.permute.xlu1 %917 }
 0x26b   :  { %v1908_v38 = vpop.eup %1907  ;;  %v677_v8 = vadd.f32 1.0, %v1906_v30  ;;  %v575_v20 = vmul.f32 0.5, %v2406_v62  ;;  %v584_v62 = vmul.f32 0.5, %v2409_v0  ;;  %v585_v16 = vmul.f32 0.5, %v551_v17 }
 0x26c   :  { %v1910_v34 = vpop.eup %1909  ;;  %v675_v39 = vadd.f32 1.0, %v1908_v38  ;;  %1765 = vmatpush3.bf16.msra.mxu0 %v724_v59  ;;  %v706_v57 = vmul.f32 %v674_v25, %v578_v35  ;;  %v582_v49 = vmul.f32 0.5, %v2414_v28  ;;  %v583_v11 = vmul.f32 0.5, %v2433_v23  ;;  %v1973_v28 = vld [vmem:[#allocation2] sm:$0xff]  ;;  %v923_v59 = vpop.permute.xlu0 %922  ;;  %v1975_v38 = vld [vmem:[#allocation2 + $0x10] sm:$0xff] }
 0x26d   :  { %v1912_v44 = vpop.eup %1911  ;;  %v709_v46 = vmul.f32 %v677_v8, %v581_v15  ;;  %v672_v13 = vadd.f32 1.0, %v1910_v34  ;;  %1766 = vmatprep.subr.bf16.mxu0 %v2060_v36  ;;  %v1976_v34 = vld [vmem:[#allocation2 + $0x18] sm:$0xff] }
 0x26e   :  { %v1914_v63 = vpop.eup %1913  ;;  %v707_v10 = vmul.f32 %v675_v39, %v579_v41  ;;  %v670_v37 = vadd.f32 1.0, %v1912_v44 }
 0x26f   :  { %v1916_v19 = vpop.eup %1915  ;;  %v729_v27 = vpack.c.bf16 %v709_v46, %v708_v24  ;;  %v673_v31 = vadd.f32 1.0, %v1914_v63  ;;  %v704_v3 = vmul.f32 %v672_v13, %v576_v40  ;;  %v1977_v24 = vld [vmem:[#allocation2 + $0x20] sm:$0xff] }
 0x270   :  { %v1918_v48 = vpop.eup %1917  ;;  %v728_v43 = vpack.c.bf16 %v707_v10, %v706_v57  ;;  %v671_v45 = vadd.f32 1.0, %v1916_v19  ;;  %1767 = vmatpush3.bf16.msra.mxu0 %v725_v4  ;;  %v702_v47 = vmul.f32 %v670_v37, %v574_v54  ;;  %v1978_v10 = vld [vmem:[#allocation2 + $0x28] sm:$0xff] }
 0x271   :  { %v1920_v1 = vpop.eup %1919  ;;  %v705_v6 = vmul.f32 %v673_v31, %v577_v9  ;;  %1768 = vmatprep.subr.bf16.mxu0 %v2060_v36  ;;  %v680_v60 = vadd.f32 1.0, %v1918_v48  ;;  %v1979_v9 = vld [vmem:[#allocation2 + $0x30] sm:$0xff] }
 0x272   :  { %v703_v5 = vmul.f32 %v671_v45, %v575_v20  ;;  %1777 = vmatpush3.bf16.msra.mxu1 %v728_v43  ;;  %v1922_v61 = vpop.eup %1921  ;;  %v678_v58 = vadd.f32 1.0, %v1920_v1  ;;  %v1980_v20 = vld [vmem:[#allocation2 + $0x38] sm:$0xff] }
 0x273   :  { %v727_v50 = vpack.c.bf16 %v705_v6, %v704_v3  ;;  %1778 = vmatprep.subr.bf16.mxu1 %v2060_v36  ;;  %v1924_v55 = vpop.eup %1923  ;;  %v681_v52 = vadd.f32 1.0, %v1922_v61  ;;  %v712_v18 = vmul.f32 %v680_v60, %v584_v62  ;;  %v1805_v6 = vld [vmem:[%s2650_s9] ss:$8 sps:$4 sm:$0xff]  }
 0x274   :  { %v726_v7 = vpack.c.bf16 %v703_v5, %v702_v47  ;;  %v679_v14 = vadd.f32 1.0, %v1924_v55  ;;  %v710_v53 = vmul.f32 %v678_v58, %v582_v49  ;;  %v1807_v47 = vld [vmem:[%s2650_s9 + $0x4] ss:$8 sps:$4 sm:$0xff]   ;;  %v1810_v5 = vld [vmem:[%s2650_s9 + $0x14] ss:$8 sps:$4 sm:$0xff]  }
 0x275   :  { %v713_v21 = vmul.f32 %v681_v52, %v585_v16 }
 0x276   :  { %1769 = vmatpush3.bf16.msra.mxu0 %v726_v7  ;;  %1779 = vmatpush3.bf16.msra.mxu1 %v729_v27  ;;  %v711_v22 = vmul.f32 %v679_v14, %v583_v11 }
 0x277   :  { %1770 = vmatprep.subr.bf16.mxu0 %v2060_v36  ;;  %1780 = vmatprep.subr.bf16.mxu1 %v2060_v36  ;;  %v731_v4 = vpack.c.bf16 %v713_v21, %v712_v18 }
 0x278   :  { %v730_v12 = vpack.c.bf16 %v711_v22, %v710_v53 }
 0x27a   :  { %1771 = vmatpush3.bf16.msra.mxu0 %v727_v50  ;;  %1781 = vmatpush3.bf16.msra.mxu1 %v730_v12  ;;  %v1808_v50 = vld [vmem:[%s2650_s9 + $0x10] ss:$8 sps:$4 sm:$0xff]  }
 0x27b   :  { %1782 = vmatprep.subr.bf16.mxu1 %v2060_v36  ;;  %1163 = vmatprep.subr.bf16.mxu0 %v1807_v47 }
 0x27d   :  { %1773 = vmatmul.mubr.msk.bf16.vlgmr.msra.gmra.mrb[20].mxu0 %vm737_vm2, %v2394_v51 }
 0x27e   :  { %1195 = vmatprep.mubr.bf16.mxu0 %v2059_v42  ;;  %1783 = vmatpush3.bf16.msra.mxu1 %v731_v4 }
 0x27f   :  { %1164 = vmatpush1.bf16.msra.mxu0 %v1805_v6 }
 0x280   :  { %1165 = vmatprep.subr.bf16.mxu0 %v1810_v5 }
 0x281   :  { %1785 = vmatmul.mubr.msk.bf16.vlgmr.msra.gmra.mrb[20].mxu1 %vm737_vm2, %v2394_v51 }
 0x283   :  { %1166 = vmatpush1.bf16.msra.mxu0 %v1808_v50 }
 0x337   :  { %v775_v0 = vpop.f32.mrb[16].mxu0 }
 0x338   :  { %v905_v17 = vadd.f32 %v1973_v28, %v775_v0  ;;  %v1750_v23 = vpop.f32.mrb[17].mxu0 }
 0x339   :  { %v778_v29 = vpop.f32.mrb[18].mxu0 }
 0x33a   :  { %v2463_v32 = vadd.f32 %v918_v26, %v905_v17  ;;  %v906_v56 = vadd.f32 %v1974_v33, %v778_v29  ;;  %v1751_v30 = vpop.f32.mrb[19].mxu0 }
 0x33b   :  { %v816_v36 = vpop.f32.mrb[16].mxu1 }
 0x33c   :  { %v2465_v25 = vadd.f32 %v923_v59, %v906_v56  ;;  %935 = vadd.xlane.f32.xlu1 %v2463_v32  ;;  %v907_v2 = vadd.f32 %v1975_v38, %v816_v36  ;;  %v1762_v51 = vpop.f32.mrb[17].mxu1  ;;  %v1813_v56 = vld [vmem:[%s2650_s9 + $0x24] ss:$8 sps:$4 sm:$0xff]   ;;  %v1811_v36 = vld [vmem:[%s2650_s9 + $0x20] ss:$8 sps:$4 sm:$0xff]  }
 0x33d   :  { %v819_v15 = vpop.f32.mrb[18].mxu1  ;;  %1167 = vmatprep.subr.bf16.mxu0 %v1813_v56 }
 0x33e   :  { %937 = vadd.xlane.f32.xlu0 %v2465_v25  ;;  %v2469_v8 = vadd.f32 %v918_v26, %v907_v2  ;;  %v908_v35 = vadd.f32 %v1976_v34, %v819_v15  ;;  %v1763_v41 = vpop.f32.mrb[19].mxu1  ;;  %1168 = vmatpush1.bf16.msra.mxu0 %v1811_v36  ;;  %v1816_v15 = vld [vmem:[%s2650_s9 + $0x34] ss:$8 sps:$4 sm:$0xff]  }
 0x33f   :  { %v1814_v41 = vld [vmem:[%s2650_s9 + $0x30] ss:$8 sps:$4 sm:$0xff]   ;;  %1169 = vmatprep.subr.bf16.mxu0 %v1816_v15 }
 0x340   :  { %v2471_v39 = vadd.f32 %v923_v59, %v908_v35 }
 0x342   :  { %939 = vadd.xlane.f32.xlu0 %v2469_v8  ;;  %941 = vadd.xlane.f32.xlu1 %v2471_v39 }
 0x343   :  { %1170 = vmatpush1.bf16.msra.mxu0 %v1814_v41 }
 0x350   :  { %v857_v44 = vpop.f32.mrb[20].mxu0 }
 0x351   :  { %v909_v46 = vadd.f32 %v1977_v24, %v857_v44  ;;  %v1774_v13 = vpop.f32.mrb[21].mxu0  ;;  %v1819_v44 = vld [vmem:[%s2650_s9 + $0x44] ss:$8 sps:$4 sm:$0xff]  }
 0x352   :  { %v860_v63 = vpop.f32.mrb[22].mxu0  ;;  %1171 = vmatprep.subr.bf16.mxu0 %v1819_v44  ;;  %v1822_v13 = vld [vmem:[%s2650_s9 + $0x54] ss:$8 sps:$4 sm:$0xff]  }
 0x353   :  { %v2475_v57 = vadd.f32 %v918_v26, %v909_v46  ;;  %v910_v37 = vadd.f32 %v1978_v10, %v860_v63  ;;  %v1775_v19 = vpop.f32.mrb[23].mxu0  ;;  %v1817_v46 = vld [vmem:[%s2650_s9 + $0x40] ss:$8 sps:$4 sm:$0xff]   ;;  %v1820_v63 = vld [vmem:[%s2650_s9 + $0x50] ss:$8 sps:$4 sm:$0xff]  }
 0x354   :  { %v898_v40 = vpop.f32.mrb[20].mxu1  ;;  %1172 = vmatpush1.bf16.msra.mxu0 %v1817_v46  ;;  %v1825_v10 = vld [vmem:[%s2650_s9 + $0x64] ss:$8 sps:$4 sm:$0xff]   ;;  %v1828_v19 = vld [vmem:[%s2650_s9 + $0x74] ss:$8 sps:$4 sm:$0xff]  }
 0x355   :  { %v2477_v27 = vadd.f32 %v923_v59, %v910_v37  ;;  %943 = vadd.xlane.f32.xlu0 %v2475_v57  ;;  %v911_v31 = vadd.f32 %v1979_v9, %v898_v40  ;;  %v1786_v48 = vpop.f32.mrb[21].mxu1  ;;  %1173 = vmatprep.subr.bf16.mxu0 %v1822_v13  ;;  %v1823_v37 = vld [vmem:[%s2650_s9 + $0x60] ss:$8 sps:$4 sm:$0xff]   ;;  %v1826_v40 = vld [vmem:[%s2650_s9 + $0x70] ss:$8 sps:$4 sm:$0xff]  }
 0x356   :  { %v901_v43 = vpop.f32.mrb[22].mxu1  ;;  %v1829_v9 = vld [vmem:[#allocation5 + $0x40] sm:$0xff]   ;;  %v1831_v48 = vld [vmem:[#allocation5 + $0x48] sm:$0xff]  }
 0x357   :  { %945 = vadd.xlane.f32.xlu1 %v2477_v27  ;;  %v2481_v54 = vadd.f32 %v918_v26, %v911_v31  ;;  %v912_v45 = vadd.f32 %v1980_v20, %v901_v43  ;;  %v1787_v1 = vpop.f32.mrb[23].mxu1  ;;  %v1830_v31 = vld [vmem:[#allocation5] sm:$0xff]   ;;  %1660 = vmatprep.subr.bf16.mxu1 %v1829_v9  ;;  %v1832_v43 = vld [vmem:[#allocation5 + $0x8] sm:$0xff]  }
 0x358   :  { %1174 = vmatpush1.bf16.msra.mxu0 %v1820_v63  ;;  %1661 = vmatpush3.bf16.msra.mxu1 %v1830_v31 }
 0x359   :  { %v2483_v3 = vadd.f32 %v923_v59, %v912_v45  ;;  %947 = vadd.xlane.f32.xlu0 %v2481_v54  ;;  %1175 = vmatprep.subr.bf16.mxu0 %v1825_v10 }
 0x35a   :  { %1662 = vmatprep.subr.bf16.mxu1 %v1831_v48 }
 0x35b   :  { %949 = vadd.xlane.f32.xlu1 %v2483_v3 }
 0x35c   :  { %1176 = vmatpush1.bf16.msra.mxu0 %v1823_v37  ;;  %1663 = vmatpush3.bf16.msra.mxu1 %v1832_v43 }
 0x35d   :  { %1177 = vmatprep.subr.bf16.mxu0 %v1828_v19 }
 0x360   :  { %1178 = vmatpush1.bf16.msra.mxu0 %v1826_v40 }
 0x3c9   :  { %v936_v60 = vpop.xlane.xlu1 %935 }
 0x3ca   :  { %v951_v61 = vmul.f32 0.0078125, %v936_v60 }
 0x3cb   :  { %v938_v7 = vpop.xlane.xlu0 %937 }
 0x3cc   :  { %v2500_v58 = vsub.f32 %v2463_v32, %v951_v61  ;;  %v952_v55 = vmul.f32 0.0078125, %v938_v7 }
 0x3ce   :  { %v2503_v62 = vsub.f32 %v2465_v25, %v952_v55  ;;  %v967_v16 = vmul.f32 %v2500_v58, %v2500_v58 }
 0x3cf   :  { %v940_v52 = vpop.xlane.xlu0 %939  ;;  %v942_v14 = vpop.xlane.xlu1 %941 }
 0x3d0   :  { %v953_v49 = vmul.f32 0.0078125, %v940_v52  ;;  %975 = vadd.xlane.f32.xlu0 %v967_v16  ;;  %v968_v11 = vmul.f32 %v2503_v62, %v2503_v62  ;;  %v954_v18 = vmul.f32 0.0078125, %v942_v14 }
 0x3d2   :  { %v2510_v21 = vsub.f32 %v2469_v8, %v953_v49  ;;  %977 = vadd.xlane.f32.xlu1 %v968_v11  ;;  %v2513_v53 = vsub.f32 %v2471_v39, %v954_v18  ;;  %v1585_v49 = vld [vmem:[%s2648_s7] ss:$0 sm:$0xff] }
 0x3d4   :  { %v969_v22 = vmul.f32 %v2510_v21, %v2510_v21  ;;  %v970_v4 = vmul.f32 %v2513_v53, %v2513_v53 }
 0x3d6   :  { %979 = vadd.xlane.f32.xlu0 %v969_v22  ;;  %981 = vadd.xlane.f32.xlu1 %v970_v4  ;;  %v1586_v4 = vld [vmem:[%s2649_s8] ss:$0 sm:$0xff] }
 0x3e2   :  { %v944_v12 = vpop.xlane.xlu0 %943 }
 0x3e3   :  { %v955_v0 = vmul.f32 0.0078125, %v944_v12 }
 0x3e4   :  { %v946_v28 = vpop.xlane.xlu1 %945 }
 0x3e5   :  { %v2520_v17 = vsub.f32 %v2475_v57, %v955_v0  ;;  %v956_v23 = vmul.f32 0.0078125, %v946_v28 }
 0x3e6   :  { %v948_v33 = vpop.xlane.xlu0 %947 }
 0x3e7   :  { %v2523_v26 = vsub.f32 %v2477_v27, %v956_v23  ;;  %v971_v29 = vmul.f32 %v2520_v17, %v2520_v17  ;;  %v957_v30 = vmul.f32 0.0078125, %v948_v33 }
 0x3e8   :  { %v950_v38 = vpop.xlane.xlu1 %949 }
 0x3e9   :  { %983 = vadd.xlane.f32.xlu0 %v971_v29  ;;  %v972_v59 = vmul.f32 %v2523_v26, %v2523_v26  ;;  %v2536_v2 = vsub.f32 %v2481_v54, %v957_v30  ;;  %v958_v51 = vmul.f32 0.0078125, %v950_v38 }
 0x3eb   :  { %985 = vadd.xlane.f32.xlu1 %v972_v59  ;;  %v2542_v34 = vsub.f32 %v2483_v3, %v958_v51  ;;  %v973_v35 = vmul.f32 %v2536_v2, %v2536_v2 }
 0x3ed   :  { %987 = vadd.xlane.f32.xlu0 %v973_v35  ;;  %v974_v24 = vmul.f32 %v2542_v34, %v2542_v34 }
 0x3ef   :  { %989 = vadd.xlane.f32.xlu1 %v974_v24 }
 0x45d   :  { %v976_v20 = vpop.xlane.xlu0 %975 }
 0x45e   :  { %v991_v45 = vmul.f32 0.0078125, %v976_v20 }
 0x45f   :  { %v978_v1 = vpop.xlane.xlu1 %977 }
 0x460   :  { %v999_v6 = vadd.f32 1e-05, %v991_v45  ;;  %v992_v47 = vmul.f32 0.0078125, %v978_v1 }
 0x462   :  { %1925 = vrsqrt.f32 %v999_v6  ;;  %v1000_v5 = vadd.f32 1e-05, %v992_v47 }
 0x463   :  { %v980_v50 = vpop.xlane.xlu0 %979  ;;  %v982_v61 = vpop.xlane.xlu1 %981 }
 0x464   :  { %1927 = vrsqrt.f32 %v1000_v5  ;;  %v993_v60 = vmul.f32 0.0078125, %v980_v50  ;;  %v994_v7 = vmul.f32 0.0078125, %v982_v61 }
 0x466   :  { %v1001_v55 = vadd.f32 1e-05, %v993_v60  ;;  %v1002_v16 = vadd.f32 1e-05, %v994_v7 }
 0x468   :  { %1929 = vrsqrt.f32 %v1001_v55  ;;  %v1834_v55 = vld [vmem:[#allocation5 + $0x10] sm:$0xff]  }
 0x469   :  { %1931 = vrsqrt.f32 %v1002_v16  ;;  %v1835_v16 = vld [vmem:[#allocation5 + $0x58] sm:$0xff]  }
 0x46c   :  { %v1926_v52 = vpop.eup %1925 }
 0x46d   :  { %v1015_v11 = vmul.f32 %v1926_v52, %v2500_v58  ;;  %v1836_v52 = vld [vmem:[#allocation5 + $0x18] sm:$0xff]  }
 0x46e   :  { %v1928_v14 = vpop.eup %1927 }
 0x46f   :  { %v1016_v18 = vmul.f32 %v1928_v14, %v2503_v62  ;;  %v1029_v22 = vmul.f32 %v1585_v49, %v1015_v11  ;;  %v1838_v11 = vld [vmem:[#allocation5 + $0x20] sm:$0xff]   ;;  %v1842_v14 = vld [vmem:[#allocation5 + $0x30] sm:$0xff]  }
 0x471   :  { %v1030_v12 = vmul.f32 %v1585_v49, %v1016_v18  ;;  %v1043_v28 = vadd.f32 %v1586_v4, %v1029_v22  ;;  %v1843_v18 = vld [vmem:[#allocation5 + $0x78] sm:$0xff]  }
 0x472   :  { %v1930_v0 = vpop.eup %1929  ;;  %v1844_v22 = vld [vmem:[#allocation5 + $0x38] sm:$0xff]  }
 0x473   :  { %v1044_v23 = vadd.f32 %v1586_v4, %v1030_v12  ;;  %v1017_v29 = vmul.f32 %v1930_v0, %v2510_v21  ;;  %v1932_v33 = vpop.eup %1931 }
 0x474   :  { %v1018_v30 = vmul.f32 %v1932_v33, %v2513_v53 }
 0x475   :  { %v1051_v56 = vpack.c.bf16 %v1044_v23, %v1043_v28  ;;  %v1031_v59 = vmul.f32 %v1585_v49, %v1017_v29  ;;  %v1071_v28 = vld [vmem:[%s2651_s10] sm:$0x3] }
 0x476   :  { %v1032_v58 = vmul.f32 %v1585_v49, %v1018_v30  ;;  %v984_v36 = vpop.xlane.xlu0 %983 }
 0x477   :  { %1196 = vmatmul.mubr.bf16.vlgmr.msra.gmra.mrb[24].mxu0 %v1051_v56  ;;  %v995_v62 = vmul.f32 0.0078125, %v984_v36  ;;  %v1045_v38 = vadd.f32 %v1586_v4, %v1031_v59 }
 0x478   :  { %1205 = vmatprep.mubr.bf16.mxu0 %v2059_v42  ;;  %v1046_v51 = vadd.f32 %v1586_v4, %v1032_v58  ;;  %v986_v15 = vpop.xlane.xlu1 %985 }
 0x479   :  { %v1003_v35 = vadd.f32 1e-05, %v995_v62  ;;  %v996_v41 = vmul.f32 0.0078125, %v986_v15 }
 0x47a   :  { %v1052_v24 = vpack.c.bf16 %v1046_v51, %v1045_v38  ;;  %v988_v21 = vpop.xlane.xlu0 %987 }
 0x47b   :  { %1933 = vrsqrt.f32 %v1003_v35  ;;  %v1004_v44 = vadd.f32 1e-05, %v996_v41  ;;  %v997_v46 = vmul.f32 0.0078125, %v988_v21 }
 0x47c   :  { %v990_v53 = vpop.xlane.xlu1 %989 }
 0x47d   :  { %1935 = vrsqrt.f32 %v1004_v44  ;;  %v1005_v13 = vadd.f32 1e-05, %v997_v46  ;;  %v998_v63 = vmul.f32 0.0078125, %v990_v53 }
 0x47f   :  { %1206 = vmatmul.mubr.bf16.gmra.mrb[28].mxu0 %v1052_v24  ;;  %1937 = vrsqrt.f32 %v1005_v13  ;;  %v1006_v10 = vadd.f32 1e-05, %v998_v63 }
 0x480   :  { %1215 = vmatprep.mubr.bf16.mxu0 %v2059_v42 }
 0x481   :  { %1939 = vrsqrt.f32 %v1006_v10 }
 0x485   :  { %v1934_v37 = vpop.eup %1933 }
 0x486   :  { %v1019_v19 = vmul.f32 %v1934_v37, %v2520_v17 }
 0x487   :  { %v1936_v40 = vpop.eup %1935 }
 0x488   :  { %v1020_v9 = vmul.f32 %v1936_v40, %v2523_v26  ;;  %v1033_v31 = vmul.f32 %v1585_v49, %v1019_v19  ;;  %v1833_v26 = vld [vmem:[#allocation5 + $0x50] sm:$0xff]  }
 0x489   :  { %v1938_v43 = vpop.eup %1937  ;;  %1664 = vmatprep.subr.bf16.mxu1 %v1833_v26 }
 0x48a   :  { %v1034_v48 = vmul.f32 %v1585_v49, %v1020_v9  ;;  %v1047_v20 = vadd.f32 %v1586_v4, %v1033_v31  ;;  %v1021_v1 = vmul.f32 %v1938_v43, %v2536_v2  ;;  %1665 = vmatpush3.bf16.msra.mxu1 %v1834_v55  ;;  %v1837_v2 = vld [vmem:[#allocation5 + $0x60] sm:$0xff]  }
 0x48b   :  { %v1940_v6 = vpop.eup %1939  ;;  %1666 = vmatprep.subr.bf16.mxu1 %v1835_v16 }
 0x48c   :  { %v1048_v45 = vadd.f32 %v1586_v4, %v1034_v48  ;;  %v1022_v5 = vmul.f32 %v1940_v6, %v2542_v34  ;;  %v1035_v50 = vmul.f32 %v1585_v49, %v1021_v1  ;;  %v1839_v34 = vld [vmem:[#allocation5 + $0x68] sm:$0xff]  }
 0x48e   :  { %v1053_v47 = vpack.c.bf16 %v1048_v45, %v1047_v20  ;;  %v1036_v60 = vmul.f32 %v1585_v49, %v1022_v5  ;;  %v1049_v61 = vadd.f32 %v1586_v4, %v1035_v50  ;;  %1667 = vmatpush3.bf16.msra.mxu1 %v1836_v52  ;;  %v1840_v49 = vld [vmem:[#allocation5 + $0x28] sm:$0xff]  }
 0x48f   :  { %1668 = vmatprep.subr.bf16.mxu1 %v1837_v2 }
 0x490   :  { %1216 = vmatmul.mubr.bf16.gmra.mrb[32].mxu0 %v1053_v47  ;;  %v1050_v17 = vadd.f32 %v1586_v4, %v1036_v60  ;;  %v1073_v4 = vlaneseq }
 0x491   :  { %1225 = vmatprep.mubr.bf16.mxu0 %v2059_v42  ;;  %v1841_v42 = vld [vmem:[#allocation5 + $0x70] sm:$0xff]  }
 0x492   :  { %v1054_v7 = vpack.c.bf16 %v1050_v17, %v1049_v61  ;;  %1669 = vmatpush3.bf16.msra.mxu1 %v1838_v11  ;;  %v1074_v12 = vshrl.u32 %v1073_v4, 7 }
 0x493   :  { %1670 = vmatprep.subr.bf16.mxu1 %v1839_v34 }
 0x494   :  { %v1075_v0 = vsub.s32 0, %v1074_v12  ;;  %v1079_v23 = vsub.s32 1, %v1074_v12 }
 0x496   :  { %1671 = vmatpush3.bf16.msra.mxu1 %v1840_v49  ;;  %v2595_v29 = vrot.slane %v1071_v28, %v1075_v0  ;;  %v2597_v33 = vrot.slane %v1071_v28, %v1079_v23 }
 0x497   :  { %1672 = vmatprep.subr.bf16.mxu1 %v1841_v42 }
 0x498   :  { %1226 = vmatmul.mubr.bf16.gmra.mrb[36].mxu0 %v1054_v7 }
 0x49a   :  { %1673 = vmatpush3.bf16.msra.mxu1 %v1842_v14 }
 0x49b   :  { %1674 = vmatprep.subr.bf16.mxu1 %v1843_v18 }
 0x49e   :  { %1675 = vmatpush3.bf16.msra.mxu1 %v1844_v22 }
 0x54a   :  { %v1197_v56 = vpop.f32.mrb[24].mxu0 }
 0x54b   :  { %v1198_v30 = vadd.f32 %v1197_v56, %v2595_v29  ;;  %v1199_v59 = vpop.f32.mrb[25].mxu0 }
 0x54c   :  { %v1200_v58 = vadd.f32 %v1199_v59, %v2597_v33  ;;  %v1201_v36 = vpop.f32.mrb[26].mxu0 }
 0x54d   :  { %v1252_v62 = vmul.f32 0.70710677, %v1198_v30  ;;  %v1202_v38 = vadd.f32 %v1201_v36, %v2595_v29  ;;  %v1203_v51 = vpop.f32.mrb[27].mxu0  ;;  %v1236_v47 = vmul.f32 0.5, %v1198_v30 }
 0x54e   :  { %v1253_v15 = vmul.f32 0.70710677, %v1200_v58  ;;  %v1204_v35 = vadd.f32 %v1203_v51, %v2597_v33  ;;  %v1237_v60 = vmul.f32 0.5, %v1200_v58 }
 0x54f   :  { %1941 = verf.f32 %v1252_v62  ;;  %v1254_v41 = vmul.f32 0.70710677, %v1202_v38  ;;  %v1238_v5 = vmul.f32 0.5, %v1202_v38 }
 0x550   :  { %1943 = verf.f32 %v1253_v15  ;;  %v1255_v44 = vmul.f32 0.70710677, %v1204_v35  ;;  %v1239_v17 = vmul.f32 0.5, %v1204_v35 }
 0x551   :  { %1945 = verf.f32 %v1254_v41 }
 0x552   :  { %1947 = verf.f32 %v1255_v44  ;;  %v1207_v24 = vpop.f32.mrb[28].mxu0 }
 0x553   :  { %v1208_v21 = vadd.f32 %v1207_v24, %v2595_v29  ;;  %v1209_v46 = vpop.f32.mrb[29].mxu0 }
 0x554   :  { %v1210_v53 = vadd.f32 %v1209_v46, %v2597_v33  ;;  %v1211_v13 = vpop.f32.mrb[30].mxu0 }
 0x555   :  { %v1256_v63 = vmul.f32 0.70710677, %v1208_v21  ;;  %v1212_v10 = vadd.f32 %v1211_v13, %v2595_v29  ;;  %v1213_v37 = vpop.f32.mrb[31].mxu0  ;;  %v1240_v22 = vmul.f32 0.5, %v1208_v21 }
 0x556   :  { %v1257_v19 = vmul.f32 0.70710677, %v1210_v53  ;;  %v1214_v40 = vadd.f32 %v1213_v37, %v2597_v33  ;;  %v1241_v0 = vmul.f32 0.5, %v1210_v53 }
 0x557   :  { %1949 = verf.f32 %v1256_v63  ;;  %v1258_v9 = vmul.f32 0.70710677, %v1212_v10  ;;  %v1242_v4 = vmul.f32 0.5, %v1212_v10 }
 0x558   :  { %1951 = verf.f32 %v1257_v19  ;;  %v1259_v31 = vmul.f32 0.70710677, %v1214_v40  ;;  %v1243_v28 = vmul.f32 0.5, %v1214_v40 }
 0x559   :  { %v1942_v48 = vpop.eup %1941  ;;  %1953 = verf.f32 %v1258_v9 }
 0x55a   :  { %v1944_v43 = vpop.eup %1943  ;;  %v1284_v20 = vadd.f32 1.0, %v1942_v48  ;;  %1955 = verf.f32 %v1259_v31 }
 0x55b   :  { %v1946_v45 = vpop.eup %1945  ;;  %v1285_v1 = vadd.f32 1.0, %v1944_v43 }
 0x55c   :  { %v1948_v6 = vpop.eup %1947  ;;  %v1286_v50 = vadd.f32 1.0, %v1946_v45  ;;  %v1300_v7 = vmul.f32 %v1284_v20, %v1236_v47 }
 0x55d   :  { %v1287_v61 = vadd.f32 1.0, %v1948_v6  ;;  %v1301_v55 = vmul.f32 %v1285_v1, %v1237_v60 }
 0x55e   :  { %v1302_v26 = vmul.f32 %v1286_v50, %v1238_v5 }
 0x55f   :  { %v1303_v16 = vmul.f32 %v1287_v61, %v1239_v17 }
 0x560   :  { %v1316_v52 = vpack.c.bf16 %v1302_v26, %v1300_v7 }
 0x561   :  { %v1950_v2 = vpop.eup %1949  ;;  %v1317_v11 = vpack.c.bf16 %v1303_v16, %v1301_v55 }
 0x562   :  { %v1952_v34 = vpop.eup %1951  ;;  %v1288_v49 = vadd.f32 1.0, %v1950_v2 }
 0x563   :  { %v1954_v42 = vpop.eup %1953  ;;  %v1289_v14 = vadd.f32 1.0, %v1952_v34  ;;  %1491 = vmatprep.mubr.bf16.mxu1 %v1317_v11  ;;  %v1217_v56 = vpop.f32.mrb[32].mxu0 }
 0x564   :  { %v1956_v18 = vpop.eup %1955  ;;  %v1290_v12 = vadd.f32 1.0, %v1954_v42  ;;  %1492 = vmatmul.mubr.bf16.vlgmr.msra.gmra.mrb[24].mxu1 %v1316_v52  ;;  %v1304_v30 = vmul.f32 %v1288_v49, %v1240_v22  ;;  %v1218_v58 = vadd.f32 %v1217_v56, %v2595_v29  ;;  %v1219_v36 = vpop.f32.mrb[33].mxu0 }
 0x565   :  { %v1291_v23 = vadd.f32 1.0, %v1956_v18  ;;  %v1305_v62 = vmul.f32 %v1289_v14, %v1241_v0  ;;  %v1220_v51 = vadd.f32 %v1219_v36, %v2597_v33  ;;  %v1221_v15 = vpop.f32.mrb[34].mxu0 }
 0x566   :  { %v1306_v59 = vmul.f32 %v1290_v12, %v1242_v4  ;;  %v1260_v35 = vmul.f32 0.70710677, %v1218_v58  ;;  %v1222_v41 = vadd.f32 %v1221_v15, %v2595_v29  ;;  %v1223_v44 = vpop.f32.mrb[35].mxu0  ;;  %v1244_v7 = vmul.f32 0.5, %v1218_v58 }
 0x567   :  { %v1307_v38 = vmul.f32 %v1291_v23, %v1243_v28  ;;  %v1261_v21 = vmul.f32 0.70710677, %v1220_v51  ;;  %v1224_v46 = vadd.f32 %v1223_v44, %v2597_v33  ;;  %v1603_v44 = vld [vmem:[%s2653_s12] ss:$0 sm:$0xff]  ;;  %s2062_s12 = smov [#allocation7]  }
 0x568   :  { %v1318_v24 = vpack.c.bf16 %v1306_v59, %v1304_v30  ;;  %1957 = verf.f32 %v1260_v35  ;;  %v1262_v13 = vmul.f32 0.70710677, %v1222_v41  ;;  %v1246_v26 = vmul.f32 0.5, %v1222_v41  ;;  %s1545_s24 = sshll.u32 %s2062_s12, 4  ;;  %s1546_s24 = int_to_ptr.vmem [resolvable:$true] %s1545_s24 }
 0x569   :  { %v1319_v53 = vpack.c.bf16 %v1307_v38, %v1305_v62  ;;  %1959 = verf.f32 %v1261_v21  ;;  %v1263_v63 = vmul.f32 0.70710677, %v1224_v46  ;;  %v1247_v16 = vmul.f32 0.5, %v1224_v46  ;;  %s2025_s25 = scalar_lea.vmem %s1546_s24, 1024  ;;  %p2030_p3 = scmp.lt.s32.totalorder %s1546_s24, %s1546_s24 }
 0x56a   :  { %1961 = verf.f32 %v1262_v13  ;;  %p2026_p2 = scmp.ne.s32.totalorder %s1546_s24, %s2025_s25  ;;  %p2031_p4 = scmp.lt.s32.totalorder %s2025_s25, %s2025_s25 }
 0x56b   :  { %1499 = vmatprep.mubr.bf16.mxu1 %v1319_v53  ;;  %1963 = verf.f32 %v1263_v63  ;;  %v1227_v10 = vpop.f32.mrb[36].mxu0 }
 0x56c   :  { %1500 = vmatmul.mubr.bf16.gmra.mrb[28].mxu1 %v1318_v24  ;;  %v1228_v37 = vadd.f32 %v1227_v10, %v2595_v29  ;;  %v1229_v19 = vpop.f32.mrb[37].mxu0  ;;  %p2032_p5 = por %p2031_p4, %p2030_p3 }
 0x56d   :  { %v1230_v40 = vadd.f32 %v1229_v19, %v2597_v33  ;;  %v1231_v9 = vpop.f32.mrb[38].mxu0 }
 0x56e   :  { %v1264_v31 = vmul.f32 0.70710677, %v1228_v37  ;;  %v1232_v48 = vadd.f32 %v1231_v9, %v2595_v29  ;;  %v1233_v43 = vpop.f32.mrb[39].mxu0  ;;  %v1245_v29 = vmul.f32 0.5, %v1220_v51  ;;  %v1248_v28 = vmul.f32 0.5, %v1228_v37  ;;  %p2033_p6 = pnand %p2032_p5, %p2026_p2 }
 0x56f   :  { %v1265_v20 = vmul.f32 0.70710677, %v1230_v40  ;;  %v1234_v45 = vadd.f32 %v1233_v43, %v2597_v33  ;;  %v1249_v30 = vmul.f32 0.5, %v1230_v40 }
 0x570   :  { %1965 = verf.f32 %v1264_v31  ;;  %v1266_v1 = vmul.f32 0.70710677, %v1232_v48  ;;  %v1250_v23 = vmul.f32 0.5, %v1232_v48 }
 0x571   :  { %1967 = verf.f32 %v1265_v20  ;;  %v1267_v6 = vmul.f32 0.70710677, %v1234_v45  ;;  %v1251_v59 = vmul.f32 0.5, %v1234_v45 }
 0x572   :  { %v1958_v47 = vpop.eup %1957  ;;  %1969 = verf.f32 %v1266_v1 }
 0x573   :  { %v1960_v5 = vpop.eup %1959  ;;  %v1292_v50 = vadd.f32 1.0, %v1958_v47  ;;  %1971 = verf.f32 %v1267_v6 }
 0x574   :  { %v1962_v60 = vpop.eup %1961  ;;  %v1293_v17 = vadd.f32 1.0, %v1960_v5 }
 0x575   :  { %v1964_v61 = vpop.eup %1963  ;;  %v1294_v55 = vadd.f32 1.0, %v1962_v60  ;;  %v1308_v2 = vmul.f32 %v1292_v50, %v1244_v7 }
 0x576   :  { %v1295_v52 = vadd.f32 1.0, %v1964_v61  ;;  %v1309_v11 = vmul.f32 %v1293_v17, %v1245_v29 }
 0x577   :  { %v1310_v33 = vmul.f32 %v1294_v55, %v1246_v26 }
 0x578   :  { %v1311_v34 = vmul.f32 %v1295_v52, %v1247_v16 }
 0x579   :  { %v1320_v49 = vpack.c.bf16 %v1310_v33, %v1308_v2 }
 0x57a   :  { %v1966_v42 = vpop.eup %1965  ;;  %v1321_v14 = vpack.c.bf16 %v1311_v34, %v1309_v11 }
 0x57b   :  { %v1968_v18 = vpop.eup %1967  ;;  %v1296_v22 = vadd.f32 1.0, %v1966_v42 }
 0x57c   :  { %v1970_v4 = vpop.eup %1969  ;;  %v1297_v12 = vadd.f32 1.0, %v1968_v18  ;;  %1507 = vmatprep.mubr.bf16.mxu1 %v1321_v14 }
 0x57d   :  { %v1972_v0 = vpop.eup %1971  ;;  %v1298_v56 = vadd.f32 1.0, %v1970_v4  ;;  %1508 = vmatmul.mubr.bf16.gmra.mrb[32].mxu1 %v1320_v49  ;;  %v1312_v36 = vmul.f32 %v1296_v22, %v1248_v28 }
 0x57e   :  { %v1299_v58 = vadd.f32 1.0, %v1972_v0  ;;  %v1313_v38 = vmul.f32 %v1297_v12, %v1249_v30 }
 0x57f   :  { %v1314_v62 = vmul.f32 %v1298_v56, %v1250_v23 }
 0x580   :  { %v1315_v51 = vmul.f32 %v1299_v58, %v1251_v59 }
 0x581   :  { %v1322_v15 = vpack.c.bf16 %v1314_v62, %v1312_v36 }
 0x582   :  { %v1323_v35 = vpack.c.bf16 %v1315_v51, %v1313_v38 }
 0x584   :  { %1515 = vmatprep.mubr.bf16.mxu1 %v1323_v35 }
 0x585   :  { %1516 = vmatmul.mubr.bf16.gmra.mrb[36].mxu1 %v1322_v15 }
 0x637   :  { %v1676_v41 = vpop.f32.mrb[24].mxu1 }
 0x638   :  { %v1677_v24 = vpop.f32.mrb[25].mxu1 }
 0x639   :  { %v1678_v21 = vadd.f32 %v1677_v24, %v1676_v41  ;;  %v1679_v46 = vpop.f32.mrb[26].mxu1 }
 0x63a   :  { %v1680_v53 = vpop.f32.mrb[27].mxu1 }
 0x63b   :  { %v1494_v13 = vadd.f32 %v1678_v21, %v1603_v44  ;;  %v1681_v63 = vadd.f32 %v1680_v53, %v1679_v46 }
 0x63d   :  { %v1524_v10 = vadd.f32 %v1494_v13, %v2463_v32  ;;  %v1497_v37 = vadd.f32 %v1681_v63, %v1603_v44 }
 0x63f   :  { %1532 = vst [vmem:[#allocation7] sm:$0xff] %v1524_v10  ;;  %v1525_v19 = vadd.f32 %v1497_v37, %v2465_v25  ;;  %v1682_v40 = vpop.f32.mrb[28].mxu1 }
 0x640   :  { %v1683_v9 = vpop.f32.mrb[29].mxu1 }
 0x641   :  { %1533 = vst [vmem:[#allocation7 + $0x8] sm:$0xff] %v1525_v19  ;;  %v1684_v31 = vadd.f32 %v1683_v9, %v1682_v40  ;;  %v1685_v48 = vpop.f32.mrb[30].mxu1 }
 0x642   :  { %v1686_v43 = vpop.f32.mrb[31].mxu1 }
 0x643   :  { %v1502_v20 = vadd.f32 %v1684_v31, %v1603_v44  ;;  %v1687_v45 = vadd.f32 %v1686_v43, %v1685_v48 }
 0x645   :  { %v1526_v1 = vadd.f32 %v1502_v20, %v2469_v8  ;;  %v1505_v6 = vadd.f32 %v1687_v45, %v1603_v44 }
 0x647   :  { %1534 = vst [vmem:[#allocation7 + $0x10] sm:$0xff] %v1526_v1  ;;  %v1527_v47 = vadd.f32 %v1505_v6, %v2471_v39 }
 0x649   :  { %1535 = vst [vmem:[#allocation7 + $0x18] sm:$0xff] %v1527_v47 }
 0x650   :  { %v1688_v32 = vpop.f32.mrb[32].mxu1 }
 0x651   :  { %v1689_v5 = vpop.f32.mrb[33].mxu1 }
 0x652   :  { %v1690_v50 = vadd.f32 %v1689_v5, %v1688_v32  ;;  %v1691_v60 = vpop.f32.mrb[34].mxu1 }
 0x653   :  { %v1692_v25 = vpop.f32.mrb[35].mxu1 }
 0x654   :  { %v1510_v17 = vadd.f32 %v1690_v50, %v1603_v44  ;;  %v1693_v61 = vadd.f32 %v1692_v25, %v1691_v60 }
 0x656   :  { %v1528_v7 = vadd.f32 %v1510_v17, %v2475_v57  ;;  %v1513_v26 = vadd.f32 %v1693_v61, %v1603_v44 }
 0x658   :  { %1536 = vst [vmem:[#allocation7 + $0x20] sm:$0xff] %v1528_v7  ;;  %v1529_v55 = vadd.f32 %v1513_v26, %v2477_v27  ;;  %v1694_v29 = vpop.f32.mrb[36].mxu1 }
 0x659   :  { %v1695_v8 = vpop.f32.mrb[37].mxu1 }
 0x65a   :  { %1537 = vst [vmem:[#allocation7 + $0x28] sm:$0xff] %v1529_v55  ;;  %v1696_v16 = vadd.f32 %v1695_v8, %v1694_v29  ;;  %v1697_v52 = vpop.f32.mrb[38].mxu1 }
 0x65b   :  { %v1698_v39 = vpop.f32.mrb[39].mxu1 }
 0x65c   :  { %v1518_v2 = vadd.f32 %v1696_v16, %v1603_v44  ;;  %v1699_v33 = vadd.f32 %v1698_v39, %v1697_v52 }
 0x65e   :  { %v1530_v11 = vadd.f32 %v1518_v2, %v2481_v54  ;;  %v1521_v34 = vadd.f32 %v1699_v33, %v1603_v44 }
 0x660   :  { %1538 = vst [vmem:[#allocation7 + $0x30] sm:$0xff] %v1530_v11  ;;  %v1531_v57 = vadd.f32 %v1521_v34, %v2483_v3 }
 0x662   :  { %1539 = vst [vmem:[#allocation7 + $0x38] sm:$0xff] %v1531_v57 }
 0x663   :  { %2036 = shalt.err (!%p2033_p6)
}
 0x664   :  { %s2037_s27 = scalar_lea.hbm %s2654_s13, 1024 }
 0x665   :  { %p2038_p7 = scmp.ne.s32.totalorder %s2654_s13, %s2037_s27  ;;  %p2041_p8 = scmp.lt.u32.totalorder %s2037_s27, %s2654_s13 }
 0x667   :  { %p2043_p9 = pnand %p2041_p8, %p2038_p7 }
 0x669   :  { %2046 = shalt.err (!%p2043_p9)
}
 0x66a   :  { %1551 = dma.vmem_to_hbm [thread:$0]  %s1546_s24, 1024, %s2654_s13, [#allocation4], %s2054_s18, %s2054_s18, %s2055_s19  }
 0x66b   :  { %2051 = dma.done.wait [#allocation4], 1024  }
 0x66c   :  { %2052 = vsyncadd [#allocation4], 4294966272 }
 0x66d   :  { %1555 = vsyncpa [#allocation3], 1 }
 0x66e   :  { %1556 = vsyncpa [#allocation6], 1 }
 0x66f   :  { %1557 = vsyncpa [#allocation4], 1 }

</bundles_post_ra>
